<compile_context>
chip_gen: v7x
topology: tpu7x:2x2x1
jax: 0.10.0
libtpu: 0.0.40
codegen_flags: <defaults>
</compile_context>

<pallas_src>
import jax
import jax.numpy as jnp
import numpy as np
from jax.experimental import pallas as pl
from jax.experimental.pallas import tpu as pltpu

C_IN, C_OUT, KH = 48, 192, 3
H, W = 28, 28
L_OUT = H * W            # 784 valid output spatial positions (n, o, l) row-major
ROW = 2 * 28             # 56 = flattened stride of the unfold (n) axis
L_PAD = 16 * ROW         # 896 = 7*128 -> lane-dense padded width
K_FUSED = KH * C_IN      # 144


def _conv_kernel(w_ref, x_ref, o_ref, taps_ref):
    # w_ref: (192,144)  x_ref: (48,896)  o_ref: (192,896)  taps_ref: (144,896) VMEM
    xp = x_ref[...]
    # Tap k needs xp[:, c + 56k] at output column c.  pltpu.roll follows
    # jnp.roll semantics (out[c] = in[(c - s) % 896]); with s = 896 - 56k this
    # is exact for every c < 784, and columns 784..895 are don't-care (sliced
    # off in the wrapper).  The rotations run on the XLU; the slabs land at
    # sublane offsets 0/48/96 -> fully aligned stores into the scratch.
    taps_ref[0:C_IN, :] = xp
    taps_ref[C_IN:2 * C_IN, :] = pltpu.roll(xp, L_PAD - ROW, axis=1)
    taps_ref[2 * C_IN:3 * C_IN, :] = pltpu.roll(xp, L_PAD - 2 * ROW, axis=1)
    # Single fused MXU matmul, K = 144, N = 896 (lane dense -> unmasked vst).
    # Default matmul precision (f32 operands, f32 accumulate) matches the
    # 1e-3 tolerance vs. a Precision.HIGHEST reference.
    o_ref[...] = jnp.dot(
        w_ref[...], taps_ref[...], preferred_element_type=jnp.float32
    ).astype(o_ref.dtype)


def conv_matmul(wf, xp):
    """wf: (192,144) f32, xp: (48,896) f32 -> (192,896) f32 (cols 784.. garbage)."""
    # Single-shot, no grid: wf 110 KiB + xp 168 KiB + taps 504 KiB + out 688 KiB
    # ~= 1.5 MiB VMEM, far under the scoped limit on v5e/v6e (128 MiB physical)
    # and v7x (64 MiB).  Deliberately no N/K pipeline and no 2-core M split:
    # total HBM traffic is <1 MiB, so per-step pipeline overhead would dominate.
    return pl.pallas_call(
        _conv_kernel,
        out_shape=jax.ShapeDtypeStruct((C_OUT, L_PAD), jnp.float32),
        in_specs=[
            pl.BlockSpec(memory_space=pltpu.MemorySpace.VMEM),
            pl.BlockSpec(memory_space=pltpu.MemorySpace.VMEM),
        ],
        out_specs=pl.BlockSpec(memory_space=pltpu.MemorySpace.VMEM),
        scratch_shapes=[pltpu.VMEM((K_FUSED, L_PAD), jnp.float32)],
        compiler_params=pltpu.CompilerParams(vmem_limit_bytes=16 * 1024 * 1024),
    )(wf, xp)


def forward(x, weight, shift):
    """x: (1,48,28,28) f32 NCHW, weight: (192,48,3) f32, shift: static python int."""
    xr = x.reshape(C_IN, 14, 2, 28)
    xr = jnp.roll(xr, shift, axis=1)      # torch.roll(..., dim=2) on (1,48,14,2,28)
    xr = jnp.roll(xr, shift, axis=3)      # output W-roll folded onto the input
    xp = jnp.pad(xr, ((0, 0), (1, 1), (0, 0), (0, 0)))   # zero pad n for 3-tap unfold
    xp = xp.reshape(C_IN, L_PAD)          # (48, 896) lane-dense padded activation
    # Fused weight: W_f[i, k*48 + j] = weight[i, j, k]  -> (192, 144).
    # (Parameter in the original module; hoist out of the per-call path in a
    #  real deployment.)
    wf = jnp.transpose(weight, (0, 2, 1)).reshape(C_OUT, K_FUSED)
    y = conv_matmul(wf, xp)               # (192, 896); cols 784.. are garbage
    return y[:, :L_OUT].reshape(1, C_OUT, H, W)


def reference(x, weight, shift):
    """Pure-JAX transliteration of the PyTorch forward (for verification)."""
    t2 = x.reshape(1, 48, 14, 2, 28)
    t2 = jnp.roll(t2, shift, axis=2)
    t2 = t2.reshape(1, 48, 14, 56)
    tp = jnp.pad(t2, ((0, 0), (0, 0), (1, 1), (0, 0)))   # unfold (3,1), pad (1,0)
    t2 = jnp.stack([tp[:, :, k:k + 14, :] for k in range(3)], axis=2)
    t2 = t2.reshape(1, 48, 3, 14, 2, 28)
    t3 = jnp.einsum('mjknol,ijk->minol', t2, weight,
                    precision=jax.lax.Precision.HIGHEST)
    t4 = t3.reshape(1, 192, 28, 28)
    return jnp.roll(t4, shift, axis=3)


if __name__ == "__main__":
    key = jax.random.PRNGKey(0)
    kx, kw = jax.random.split(key)
    # Shapes are hard-coded by the module's reshapes: x must be (1, 48, 28, 28).
    x = jax.random.normal(kx, (1, 48, 28, 28), dtype=jnp.float32)
    weight = jax.random.normal(kw, (C_OUT, C_IN, KH), dtype=jnp.float32)

    fwd = jax.jit(forward, static_argnums=2)
    # The original module randomly picks shift = +1 or -1; validate both
    # (each static shift value compiles once).
    for shift in (1, -1):
        y = fwd(x, weight, shift)
        jax.block_until_ready(y)
        y_ref = reference(x, weight, shift)
        assert y.shape == (1, C_OUT, H, W)
        np.testing.assert_allclose(np.asarray(y), np.asarray(y_ref),
                                   rtol=1e-3, atol=1e-3)
    print("KERNEL_OK")
</pallas_src>

<mosaic_0001>
module attributes {stable_mosaic.version = 11 : i64} {
  func.func @_conv_kernel(%arg0: memref<192x144xf32, #tpu.memory_space<vmem>>, %arg1: memref<48x896xf32, #tpu.memory_space<vmem>>, %arg2: memref<192x896xf32, #tpu.memory_space<vmem>>, %arg3: memref<144x896xf32, #tpu.memory_space<vmem>>) attributes {dimension_semantics = [], scalar_prefetch = 0 : i64, scratch_operands = 1 : i64, tpu.core_type = #tpu.core_type<tc>} {
    %c0 = arith.constant 0 : index
    %c0_0 = arith.constant 0 : index
    %0 = vector.load %arg1[%c0, %c0_0] : memref<48x896xf32, #tpu.memory_space<vmem>>, vector<48x896xf32>
    %c0_1 = arith.constant 0 : index
    %c0_2 = arith.constant 0 : index
    %1 = vector.load %arg3[%c0_1, %c0_2] : memref<144x896xf32, #tpu.memory_space<vmem>>, vector<48x896xf32>
    tpu.vector_store %arg3[%c0_1, %c0_2], %0 {strides = array<i32>} : memref<144x896xf32, #tpu.memory_space<vmem>>, vector<48x896xf32>,
    %c840_i32 = arith.constant 840 : i32
    %2 = tpu.dynamic_rotate %0 by %c840_i32 dim 1 : vector<48x896xf32>, i32 -> vector<48x896xf32>
    %c48 = arith.constant 48 : index
    %c0_3 = arith.constant 0 : index
    %3 = vector.load %arg3[%c48, %c0_3] : memref<144x896xf32, #tpu.memory_space<vmem>>, vector<48x896xf32>
    tpu.vector_store %arg3[%c48, %c0_3], %2 {strides = array<i32>} : memref<144x896xf32, #tpu.memory_space<vmem>>, vector<48x896xf32>,
    %c784_i32 = arith.constant 784 : i32
    %4 = tpu.dynamic_rotate %0 by %c784_i32 dim 1 : vector<48x896xf32>, i32 -> vector<48x896xf32>
    %c96 = arith.constant 96 : index
    %c0_4 = arith.constant 0 : index
    %5 = vector.load %arg3[%c96, %c0_4] : memref<144x896xf32, #tpu.memory_space<vmem>>, vector<48x896xf32>
    tpu.vector_store %arg3[%c96, %c0_4], %4 {strides = array<i32>} : memref<144x896xf32, #tpu.memory_space<vmem>>, vector<48x896xf32>,
    %c0_5 = arith.constant 0 : index
    %c0_6 = arith.constant 0 : index
    %6 = vector.load %arg0[%c0_5, %c0_6] : memref<192x144xf32, #tpu.memory_space<vmem>>, vector<192x144xf32>
    %c0_7 = arith.constant 0 : index
    %c0_8 = arith.constant 0 : index
    %7 = vector.load %arg3[%c0_7, %c0_8] : memref<144x896xf32, #tpu.memory_space<vmem>>, vector<144x896xf32>
    %cst = arith.constant dense<0.000000e+00> : vector<192x896xf32>
    %8 = tpu.matmul %6, %7, %cst {dimension_numbers = #tpu.dot_dimension_numbers<[1], [0], [0], [1], [0, 0, 1, 1], [], []>} : vector<192x144xf32>, vector<144x896xf32>, vector<192x896xf32> -> vector<192x896xf32>
    %c0_9 = arith.constant 0 : index
    %c0_10 = arith.constant 0 : index
    %9 = vector.load %arg2[%c0_9, %c0_10] : memref<192x896xf32, #tpu.memory_space<vmem>>, vector<192x896xf32>
    tpu.vector_store %arg2[%c0_9, %c0_10], %8 {strides = array<i32>} : memref<192x896xf32, #tpu.memory_space<vmem>>, vector<192x896xf32>,
    return
  }
}

</mosaic_0001>

<bundles_post_ra>
// kernel: forward.1
= control target key start
LH: loop header
LB: loop body
LE: loop exit
PB: predicated region body
PF: predicated region fallthrough
CT: control target
= control target key end

     0   :  { %s2111_s25 = smov 72   ;;  %s2112_s15 = smov 16   ;;  %vm609_vm0 = vcmask 130048   ;;  %s3805_s1 = inlined_call_operand.vmem [shape: f32[48,896], index: 1, kind: input, shape index: {}]   ;;  %s3806_s0 = inlined_call_operand.vmem [shape: f32[192,144], index: 0, kind: input, shape index: {}]   ;;  %s3807_s2 = inlined_call_operand.vmem [shape: f32[192,896], index: 2, kind: output, shape index: {}]  }
   0x1   :  { %v12_v0 = vld [vmem:[%s3805_s1 + $0x8] sm:$0xff]  ;;  %v19_v1 = vld [vmem:[%s3805_s1 + $0x40] sm:$0xff]  ;;  %v18_v4 = vld [vmem:[%s3805_s1 + $0x38] sm:$0xff] }
   0x2   :  { %v11_v2 = vld [vmem:[%s3805_s1] sm:$0xff]  ;;  %v2138_v3 = vpack.i.bf16 %v19_v1, %v12_v0  ;;  %v13_v5 = vld [vmem:[%s3805_s1 + $0x10] sm:$0xff]  ;;  %v20_v6 = vld [vmem:[%s3805_s1 + $0x48] sm:$0xff]  ;;  %v1762_v7 = vpack.c.bf16 %v19_v1, %v12_v0 }
   0x3   :  { %v2149_v8 = vpack.i.bf16 %v18_v4, %v11_v2  ;;  %v14_v9 = vld [vmem:[%s3805_s1 + $0x18] sm:$0xff]  ;;  %v21_v10 = vld [vmem:[%s3805_s1 + $0x50] sm:$0xff]  ;;  %v2159_v11 = vpack.i.bf16 %v20_v6, %v13_v5  ;;  %v2164_v12 = vld [vmem:[%s3805_s1 + $0x20] sm:$0xff]  ;;  %v1764_v13 = vpack.c.bf16 %v18_v4, %v11_v2  ;;  %v1800_v27 = vpack.c.bf16 %v20_v6, %v13_v5 }
   0x4   :  { %1901 = vrot.lane.b32.xlu0 %v2138_v3, %s2111_s25  ;;  %1763 = vmatprep.subr.bf16.mxu0 %v1762_v7  ;;  %v2168_v14 = vpack.i.bf16 %v21_v10, %v14_v9  ;;  %v2173_v15 = vld [vmem:[%s3805_s1 + $0x58] sm:$0xff]  ;;  %v33_v17 = vld [vmem:[%s3805_s1 + $0xb0] sm:$0xff]  ;;  %v1798_v19 = vpack.c.bf16 %v21_v10, %v14_v9  ;;  %v32_v21 = vld [vmem:[%s3805_s1 + $0xa8] sm:$0xff] }
   0x5   :  { %1911 = vrot.lane.b32.xlu1 %v2149_v8, %s2111_s25  ;;  %v26_v16 = vld [vmem:[%s3805_s1 + $0x78] sm:$0xff]  ;;  %1765 = vmatpush1.bf16.msra.mxu0 %v1764_v13  ;;  %v25_v20 = vld [vmem:[%s3805_s1 + $0x70] sm:$0xff]  ;;  %v1920_v22 = vpack.i.bf16 %v2173_v15, %v2164_v12  ;;  %v27_v25 = vld [vmem:[%s3805_s1 + $0x80] sm:$0xff]  ;;  %v1836_v61 = vpack.c.bf16 %v2173_v15, %v2164_v12 }
   0x6   :  { %v1766_v18 = vpack.c.bf16 %v33_v17, %v26_v16  ;;  %v1768_v23 = vpack.c.bf16 %v32_v21, %v25_v20  ;;  %v1925_v24 = vpack.i.bf16 %v33_v17, %v26_v16  ;;  %v34_v26 = vld [vmem:[%s3805_s1 + $0xb8] sm:$0xff]  ;;  %1799 = vmatprep.subr.bf16.mxu1 %v1798_v19  ;;  %v40_v28 = vld [vmem:[%s3805_s1 + $0xe8] sm:$0xff]  ;;  %v47_v29 = vld [vmem:[%s3805_s1 + $0x120] sm:$0xff]  ;;  %v1935_v33 = vpack.i.bf16 %v32_v21, %v25_v20 }
   0x7   :  { %v1930_v30 = vpack.i.bf16 %v34_v26, %v27_v25  ;;  %v28_v31 = vld [vmem:[%s3805_s1 + $0x88] sm:$0xff]  ;;  %1801 = vmatpush1.bf16.msra.mxu1 %v1800_v27  ;;  %v1770_v32 = vpack.c.bf16 %v47_v29, %v40_v28  ;;  %v35_v34 = vld [vmem:[%s3805_s1 + $0xc0] sm:$0xff]  ;;  %v46_v36 = vld [vmem:[%s3805_s1 + $0x118] sm:$0xff]  ;;  %v1804_v44 = vpack.c.bf16 %v34_v26, %v27_v25  ;;  %v1950_v50 = vpack.i.bf16 %v47_v29, %v40_v28 }
   0x8   :  { %1906 = vrot.lane.b32.xlu0 %v2159_v11, %s2111_s25  ;;  %1767 = vmatprep.subr.bf16.mxu0 %v1766_v18  ;;  %v39_v35 = vld [vmem:[%s3805_s1 + $0xe0] sm:$0xff]  ;;  %v2222_v37 = vld [vmem:[%s3805_s1 + $0x90] sm:$0xff]  ;;  %v2227_v38 = vld [vmem:[%s3805_s1 + $0xc8] sm:$0xff]  ;;  %v1802_v39 = vpack.c.bf16 %v35_v34, %v28_v31  ;;  %v1940_v43 = vpack.i.bf16 %v35_v34, %v28_v31 }
   0x9   :  { %1916 = vrot.lane.b32.xlu1 %v2168_v14, %s2111_s25  ;;  %1769 = vmatpush1.bf16.msra.mxu0 %v1768_v23  ;;  %v1772_v40 = vpack.c.bf16 %v46_v36, %v39_v35  ;;  %v42_v41 = vld [vmem:[%s3805_s1 + $0xf8] sm:$0xff]  ;;  %v49_v42 = vld [vmem:[%s3805_s1 + $0x130] sm:$0xff]  ;;  %v1945_v46 = vpack.i.bf16 %v2227_v38, %v2222_v37  ;;  %v48_v48 = vld [vmem:[%s3805_s1 + $0x128] sm:$0xff]  ;;  %v1960_v52 = vpack.i.bf16 %v46_v36, %v39_v35  ;;  %v179_v23 = vlaneseq }
   0xa   :  { %1771 = vmatprep.subr.bf16.mxu0 %v1770_v32  ;;  %1803 = vmatprep.subr.bf16.mxu1 %v1802_v39  ;;  %v1806_v45 = vpack.c.bf16 %v49_v42, %v42_v41  ;;  %v41_v47 = vld [vmem:[%s3805_s1 + $0xf0] sm:$0xff]  ;;  %v1965_v53 = vpack.i.bf16 %v49_v42, %v42_v41  ;;  %v2252_v54 = vld [vmem:[%s3805_s1 + $0x100] sm:$0xff]  ;;  %v2257_v55 = vld [vmem:[%s3805_s1 + $0x138] sm:$0xff] }
   0xb   :  { %1805 = vmatpush1.bf16.msra.mxu1 %v1804_v44  ;;  %v1808_v49 = vpack.c.bf16 %v48_v48, %v41_v47  ;;  %v1955_v51 = vpack.i.bf16 %v48_v48, %v41_v47  ;;  %v1970_v56 = vpack.i.bf16 %v2257_v55, %v2252_v54  ;;  %v2280_v57 = vld [vmem:[%s3805_s1 + $0x28] sm:$0xff]  ;;  %v2285_v58 = vld [vmem:[%s3805_s1 + $0x60] sm:$0xff]  ;;  %v2303_v62 = vld [vmem:[%s3805_s1 + $0x98] sm:$0xff] }
   0xc   :  { %1921 = vrot.lane.b32.xlu0 %v1920_v22, %s2111_s25  ;;  %1807 = vmatprep.subr.bf16.mxu1 %v1806_v45  ;;  %v1834_v59 = vpack.c.bf16 %v2285_v58, %v2280_v57  ;;  %v2293_v60 = vld [vmem:[%s3806_s0 + $0x8] sm:$0xff]  ;;  %v2308_v63 = vld [vmem:[%s3805_s1 + $0xd0] sm:$0xff]  ;;  %v2338_v6 = vld [vmem:[%s3805_s1 + $0x140] sm:$0xff]  ;;  %v2050_v10 = vpack.i.bf16 %v2285_v58, %v2280_v57 }
   0xd   :  { %1926 = vrot.lane.b32.xlu1 %v1925_v24, %s2111_s25  ;;  %1773 = vmatpush1.bf16.msra.mxu0 %v1772_v40  ;;  %v2315_v0 = vld [vmem:[%s3805_s1 + $0x30] sm:$0xff]  ;;  %v2320_v1 = vld [vmem:[%s3805_s1 + $0x68] sm:$0xff]  ;;  %v1838_v2 = vpack.c.bf16 %v2308_v63, %v2303_v62  ;;  %v2343_v7 = vld [vmem:[%s3805_s1 + $0xa0] sm:$0xff]  ;;  %v2060_v18 = vpack.i.bf16 %v2308_v63, %v2303_v62 }
   0xe   :  { %1666 = vmatprep.mubr.msk.f32.mxu0 %vm609_vm0, %v2293_v60  ;;  %1690 = vmatprep.mubr.msk.f32.mxu1 %vm609_vm0, %v2293_v60  ;;  %v1871_v4 = vpack.c.bf16 %v2320_v1, %v2315_v0  ;;  %v2333_v5 = vld [vmem:[%s3805_s1 + $0x108] sm:$0xff]  ;;  %v2365_v16 = vld [vmem:[%s3805_s1 + $0x110] sm:$0xff] }
   0xf   :  { %1809 = vmatpush1.bf16.msra.mxu1 %v1808_v49  ;;  %v1842_v9 = vpack.c.bf16 %v2338_v6, %v2333_v5  ;;  %v2370_v17 = vld [vmem:[%s3805_s1 + $0x148] sm:$0xff]  ;;  %v2070_v21 = vpack.i.bf16 %v2338_v6, %v2333_v5  ;;  %v2610_v57 = vld [vmem:[%s3806_s0 + $0x10] sm:$0xff] }
  0x10   :  { %1931 = vrot.lane.b32.xlu0 %v1930_v30, %s2111_s25  ;;  %v2644_v63 = vld [vmem:[%s3806_s0 + $0x28] sm:$0xff] }
  0x11   :  { %1936 = vrot.lane.b32.xlu1 %v1935_v33, %s2111_s25 }
  0x14   :  { %1941 = vrot.lane.b32.xlu0 %v1940_v43, %s2111_s25 }
  0x15   :  { %1946 = vrot.lane.b32.xlu1 %v1945_v46, %s2111_s25 }
  0x18   :  { %1951 = vrot.lane.b32.xlu0 %v1950_v50, %s2111_s25 }
  0x19   :  { %1956 = vrot.lane.b32.xlu1 %v1955_v51, %s2111_s25 }
  0x1c   :  { %1961 = vrot.lane.b32.xlu0 %v1960_v52, %s2111_s25 }
  0x1d   :  { %1966 = vrot.lane.b32.xlu1 %v1965_v53, %s2111_s25 }
  0x20   :  { %1971 = vrot.lane.b32.xlu0 %v1970_v56, %s2111_s25 }
  0x21   :  { %1976 = vrot.lane.b32.xlu1 %v2138_v3, %s2112_s15  ;;  %v1840_v3 = vpack.c.bf16 %v2227_v38, %v2222_v37 }
  0x24   :  { %1981 = vrot.lane.b32.xlu0 %v2159_v11, %s2112_s15  ;;  %v1844_v11 = vpack.c.bf16 %v2257_v55, %v2252_v54 }
  0x25   :  { %1986 = vrot.lane.b32.xlu1 %v2149_v8, %s2112_s15  ;;  %v2348_v8 = vld [vmem:[%s3805_s1 + $0xd8] sm:$0xff] }
  0x26   :  { %v1874_v13 = vpack.c.bf16 %v2348_v8, %v2343_v7  ;;  %v2065_v20 = vpack.i.bf16 %v2348_v8, %v2343_v7  ;;  %v2712_v7 = vld [vmem:[%s3806_s0 + $0x30] sm:$0xff] }
  0x28   :  { %1991 = vrot.lane.b32.xlu0 %v2168_v14, %s2112_s15  ;;  %v2055_v14 = vpack.i.bf16 %v2320_v1, %v2315_v0 }
  0x29   :  { %1996 = vrot.lane.b32.xlu1 %v1920_v22, %s2112_s15  ;;  %v2075_v22 = vpack.i.bf16 %v2370_v17, %v2365_v16 }
  0x2c   :  { %2001 = vrot.lane.b32.xlu0 %v1925_v24, %s2112_s15  ;;  %v2394_v24 = vand.u32 127, %v179_v23 }
  0x2d   :  { %2006 = vrot.lane.b32.xlu1 %v1930_v30, %s2112_s15 }
  0x2e   :  { %vm181_vm1 = vcmp.lt.s32.totalorder %v2394_v24, 72  ;;  %vm350_vm2 = vcmp.lt.s32.totalorder %v2394_v24, 16  ;;  %v2922_v24 = vld [vmem:[%s3806_s0 + $0x90] sm:$0xff] }
  0x30   :  { %2011 = vrot.lane.b32.xlu0 %v1935_v33, %s2112_s15 }
  0x31   :  { %2016 = vrot.lane.b32.xlu1 %v1940_v43, %s2112_s15 }
  0x34   :  { %2021 = vrot.lane.b32.xlu0 %v1945_v46, %s2112_s15 }
  0x35   :  { %2026 = vrot.lane.b32.xlu1 %v1950_v50, %s2112_s15 }
  0x38   :  { %2031 = vrot.lane.b32.xlu0 %v1955_v51, %s2112_s15 }
  0x39   :  { %2036 = vrot.lane.b32.xlu1 %v1960_v52, %s2112_s15 }
  0x3c   :  { %2041 = vrot.lane.b32.xlu0 %v1965_v53, %s2112_s15 }
  0x3d   :  { %2046 = vrot.lane.b32.xlu1 %v1970_v56, %s2112_s15 }
  0x40   :  { %2051 = vrot.lane.b32.xlu0 %v2050_v10, %s2111_s25 }
  0x41   :  { %2056 = vrot.lane.b32.xlu1 %v2055_v14, %s2111_s25 }
  0x44   :  { %2061 = vrot.lane.b32.xlu0 %v2060_v18, %s2111_s25 }
  0x45   :  { %2066 = vrot.lane.b32.xlu1 %v2065_v20, %s2111_s25 }
  0x48   :  { %2071 = vrot.lane.b32.xlu0 %v2070_v21, %s2111_s25 }
  0x49   :  { %2076 = vrot.lane.b32.xlu1 %v2075_v22, %s2111_s25 }
  0x4c   :  { %2081 = vrot.lane.b32.xlu0 %v2050_v10, %s2112_s15 }
  0x4d   :  { %2086 = vrot.lane.b32.xlu1 %v2055_v14, %s2112_s15 }
  0x50   :  { %2091 = vrot.lane.b32.xlu0 %v2060_v18, %s2112_s15 }
  0x51   :  { %2096 = vrot.lane.b32.xlu1 %v2065_v20, %s2112_s15 }
  0x54   :  { %2101 = vrot.lane.b32.xlu0 %v2070_v21, %s2112_s15 }
  0x55   :  { %2106 = vrot.lane.b32.xlu1 %v2075_v22, %s2112_s15 }
  0x76   :  { %v1902_v25 = vpop.permute.xlu0 %1901 }
  0x77   :  { %v1904_v26 = vunpack.i.h.bf16 %v1902_v25  ;;  %v1903_v27 = vunpack.i.l.bf16 %v1902_v25  ;;  %v2396_v28 = vpop.permute.xlu1 %1911 }
  0x78   :  { %v1914_v29 = vunpack.i.h.bf16 %v2396_v28  ;;  %v1913_v30 = vunpack.i.l.bf16 %v2396_v28 }
  0x7a   :  { %v1907_v31 = vpop.permute.xlu0 %1906  ;;  %v212_v35 = vsel %vm181_vm1, %v1913_v30, %v1903_v27  ;;  %v213_v36 = vsel %vm181_vm1, %v1914_v29, %v1904_v26 }
  0x7b   :  { %v1909_v32 = vunpack.i.h.bf16 %v1907_v31  ;;  %v1908_v33 = vunpack.i.l.bf16 %v1907_v31  ;;  %v1917_v34 = vpop.permute.xlu1 %1916  ;;  %v1776_v45 = vpack.c.bf16 %v213_v36, %v212_v35 }
  0x7c   :  { %v1919_v39 = vunpack.i.h.bf16 %v1917_v34  ;;  %v1918_v40 = vunpack.i.l.bf16 %v1917_v34 }
  0x7d   :  { %v206_v41 = vsel %vm181_vm1, %v1903_v27, %v1908_v33  ;;  %v207_v42 = vsel %vm181_vm1, %v1904_v26, %v1909_v32 }
  0x7e   :  { %v2413_v43 = vpop.permute.xlu0 %1921  ;;  %v1774_v44 = vpack.c.bf16 %v207_v42, %v206_v41  ;;  %v200_v49 = vsel %vm181_vm1, %v1908_v33, %v1918_v40  ;;  %v201_v50 = vsel %vm181_vm1, %v1909_v32, %v1919_v39 }
  0x7f   :  { %v1924_v46 = vunpack.i.h.bf16 %v2413_v43  ;;  %v1923_v47 = vunpack.i.l.bf16 %v2413_v43  ;;  %v1927_v48 = vpop.permute.xlu1 %1926  ;;  %v1812_v10 = vpack.c.bf16 %v201_v50, %v200_v49 }
  0x80   :  { %1775 = vmatprep.subr.bf16.mxu0 %v1774_v44  ;;  %v1929_v14 = vunpack.i.h.bf16 %v1927_v48  ;;  %v1928_v18 = vunpack.i.l.bf16 %v1927_v48 }
  0x81   :  { %1777 = vmatpush1.bf16.msra.mxu0 %v1776_v45  ;;  %v194_v51 = vsel %vm181_vm1, %v1918_v40, %v1923_v47  ;;  %v195_v52 = vsel %vm181_vm1, %v1919_v39, %v1924_v46 }
  0x82   :  { %v1932_v53 = vpop.permute.xlu0 %1931  ;;  %v1810_v56 = vpack.c.bf16 %v195_v52, %v194_v51 }
  0x83   :  { %v1934_v20 = vunpack.i.h.bf16 %v1932_v53  ;;  %v1933_v21 = vunpack.i.l.bf16 %v1932_v53  ;;  %v2429_v22 = vpop.permute.xlu1 %1936 }
  0x84   :  { %v1939_v23 = vunpack.i.h.bf16 %v2429_v22  ;;  %v1938_v25 = vunpack.i.l.bf16 %v2429_v22  ;;  %1811 = vmatprep.subr.bf16.mxu1 %v1810_v56  ;;  %v2672_v22 = vld [vmem:[%s3806_s0 + $0x20] sm:$0xff] }
  0x85   :  { %1813 = vmatpush1.bf16.msra.mxu1 %v1812_v10  ;;  %v208_v26 = vsel %vm181_vm1, %v1928_v18, %v1933_v21  ;;  %v209_v27 = vsel %vm181_vm1, %v1929_v14, %v1934_v20 }
  0x86   :  { %v1942_v31 = vpop.permute.xlu0 %1941  ;;  %v1778_v32 = vpack.c.bf16 %v209_v27, %v208_v26  ;;  %v214_v33 = vsel %vm181_vm1, %v1938_v25, %v1928_v18  ;;  %v215_v34 = vsel %vm181_vm1, %v1939_v23, %v1929_v14 }
  0x87   :  { %v1944_v35 = vunpack.i.h.bf16 %v1942_v31  ;;  %v1943_v36 = vunpack.i.l.bf16 %v1942_v31  ;;  %v2445_v39 = vpop.permute.xlu1 %1946  ;;  %v1780_v40 = vpack.c.bf16 %v215_v34, %v214_v33 }
  0x88   :  { %v3818_v41 = vunpack.i.h.bf16 %v2445_v39  ;;  %v1948_v42 = vunpack.i.l.bf16 %v2445_v39  ;;  %1779 = vmatprep.subr.bf16.mxu0 %v1778_v32 }
  0x89   :  { %1781 = vmatpush1.bf16.msra.mxu0 %v1780_v40  ;;  %v202_v44 = vsel %vm181_vm1, %v1933_v21, %v1943_v36  ;;  %v203_v45 = vsel %vm181_vm1, %v1934_v20, %v1944_v35 }
  0x8a   :  { %v1952_v48 = vpop.permute.xlu0 %1951  ;;  %v196_v49 = vsel %vm181_vm1, %v1943_v36, %v1948_v42  ;;  %v197_v50 = vsel %vm181_vm1, %v1944_v35, %v3818_v41  ;;  %v1816_v51 = vpack.c.bf16 %v203_v45, %v202_v44 }
  0x8b   :  { %v1954_v52 = vunpack.i.h.bf16 %v1952_v48  ;;  %v1953_v53 = vunpack.i.l.bf16 %v1952_v48  ;;  %v1957_v56 = vpop.permute.xlu1 %1956  ;;  %v1814_v10 = vpack.c.bf16 %v197_v50, %v196_v49 }
  0x8c   :  { %v1959_v14 = vunpack.i.h.bf16 %v1957_v56  ;;  %v1958_v18 = vunpack.i.l.bf16 %v1957_v56 }
  0x8d   :  { %1815 = vmatprep.subr.bf16.mxu1 %v1814_v10 }
  0x8e   :  { %1817 = vmatpush1.bf16.msra.mxu1 %v1816_v51  ;;  %v2461_v20 = vpop.permute.xlu0 %1961  ;;  %v210_v21 = vsel %vm181_vm1, %v1953_v53, %v1958_v18  ;;  %v211_v26 = vsel %vm181_vm1, %v1954_v52, %v1959_v14 }
  0x8f   :  { %v3809_v27 = vunpack.i.h.bf16 %v2461_v20  ;;  %v3808_v31 = vunpack.i.l.bf16 %v2461_v20  ;;  %v1967_v32 = vpop.permute.xlu1 %1966  ;;  %v1782_v33 = vpack.c.bf16 %v211_v26, %v210_v21 }
  0x90   :  { %v1969_v34 = vunpack.i.h.bf16 %v1967_v32  ;;  %v1968_v35 = vunpack.i.l.bf16 %v1967_v32 }
  0x91   :  { %1783 = vmatprep.subr.bf16.mxu0 %v1782_v33  ;;  %v216_v36 = vsel %vm181_vm1, %v3808_v31, %v1953_v53  ;;  %v217_v40 = vsel %vm181_vm1, %v3809_v27, %v1954_v52 }
  0x92   :  { %v2477_v44 = vpop.permute.xlu0 %1971  ;;  %v1784_v45 = vpack.c.bf16 %v217_v40, %v216_v36  ;;  %v204_v51 = vsel %vm181_vm1, %v1958_v18, %v1968_v35  ;;  %v205_v56 = vsel %vm181_vm1, %v1959_v14, %v1969_v34 }
  0x93   :  { %v3812_v48 = vunpack.i.h.bf16 %v2477_v44  ;;  %v3817_v49 = vunpack.i.l.bf16 %v2477_v44  ;;  %v1977_v50 = vpop.permute.xlu1 %1976  ;;  %v1820_v26 = vpack.c.bf16 %v205_v56, %v204_v51 }
  0x94   :  { %1785 = vmatpush1.bf16.msra.mxu0 %v1784_v45  ;;  %v1979_v18 = vunpack.i.h.bf16 %v1977_v50  ;;  %v1978_v32 = vunpack.i.l.bf16 %v1977_v50 }
  0x95   :  { %v198_v52 = vsel %vm181_vm1, %v1968_v35, %v3817_v49  ;;  %v199_v53 = vsel %vm181_vm1, %v1969_v34, %v3812_v48 }
  0x96   :  { %v1982_v10 = vpop.permute.xlu0 %1981  ;;  %v1818_v21 = vpack.c.bf16 %v199_v53, %v198_v52 }
  0x97   :  { %v1984_v33 = vunpack.i.h.bf16 %v1982_v10  ;;  %v1983_v14 = vunpack.i.l.bf16 %v1982_v10  ;;  %v2494_v36 = vpop.permute.xlu1 %1986 }
  0x98   :  { %v3810_v40 = vunpack.i.h.bf16 %v2494_v36  ;;  %v3811_v35 = vunpack.i.l.bf16 %v2494_v36  ;;  %1819 = vmatprep.subr.bf16.mxu1 %v1818_v21 }
  0x99   :  { %1821 = vmatpush1.bf16.msra.mxu1 %v1820_v26  ;;  %v375_v34 = vsel %vm350_vm2, %v1978_v32, %v1983_v14  ;;  %v376_v45 = vsel %vm350_vm2, %v1979_v18, %v1984_v33 }
  0x9a   :  { %v1992_v51 = vpop.permute.xlu0 %1991  ;;  %v1786_v56 = vpack.c.bf16 %v376_v45, %v375_v34  ;;  %v381_v50 = vsel %vm350_vm2, %v3811_v35, %v1978_v32  ;;  %v382_v52 = vsel %vm350_vm2, %v3810_v40, %v1979_v18 }
  0x9b   :  { %v1994_v53 = vunpack.i.h.bf16 %v1992_v51  ;;  %v1993_v10 = vunpack.i.l.bf16 %v1992_v51  ;;  %v2510_v21 = vpop.permute.xlu1 %1996  ;;  %v1788_v26 = vpack.c.bf16 %v382_v52, %v381_v50 }
  0x9c   :  { %v3814_v31 = vunpack.i.h.bf16 %v2510_v21  ;;  %v3813_v27 = vunpack.i.l.bf16 %v2510_v21  ;;  %1787 = vmatprep.subr.bf16.mxu0 %v1786_v56 }
  0x9d   :  { %1789 = vmatpush1.bf16.msra.mxu0 %v1788_v26  ;;  %v369_v34 = vsel %vm350_vm2, %v1983_v14, %v1993_v10  ;;  %v370_v32 = vsel %vm350_vm2, %v1984_v33, %v1994_v53 }
  0x9e   :  { %v2002_v45 = vpop.permute.xlu0 %2001  ;;  %v363_v18 = vsel %vm350_vm2, %v1993_v10, %v3813_v27  ;;  %v364_v51 = vsel %vm350_vm2, %v1994_v53, %v3814_v31  ;;  %v1824_v50 = vpack.c.bf16 %v370_v32, %v369_v34 }
  0x9f   :  { %v2004_v56 = vunpack.i.h.bf16 %v2002_v45  ;;  %v2003_v52 = vunpack.i.l.bf16 %v2002_v45  ;;  %v2007_v26 = vpop.permute.xlu1 %2006  ;;  %v1822_v40 = vpack.c.bf16 %v364_v51, %v363_v18 }
  0xa0   :  { %v2009_v14 = vunpack.i.h.bf16 %v2007_v26  ;;  %v2008_v35 = vunpack.i.l.bf16 %v2007_v26 }
  0xa1   :  { %1823 = vmatprep.subr.bf16.mxu1 %v1822_v40 }
  0xa2   :  { %1825 = vmatpush1.bf16.msra.mxu1 %v1824_v50  ;;  %v2526_v33 = vpop.permute.xlu0 %2011  ;;  %v377_v48 = vsel %vm350_vm2, %v2003_v52, %v2008_v35  ;;  %v378_v10 = vsel %vm350_vm2, %v2004_v56, %v2009_v14 }
  0xa3   :  { %v3816_v27 = vunpack.i.h.bf16 %v2526_v33  ;;  %v3815_v53 = vunpack.i.l.bf16 %v2526_v33  ;;  %v2017_v34 = vpop.permute.xlu1 %2016  ;;  %v1790_v32 = vpack.c.bf16 %v378_v10, %v377_v48 }
  0xa4   :  { %v2019_v45 = vunpack.i.h.bf16 %v2017_v34  ;;  %v2018_v18 = vunpack.i.l.bf16 %v2017_v34 }
  0xa5   :  { %1791 = vmatprep.subr.bf16.mxu0 %v1790_v32  ;;  %v383_v40 = vsel %vm350_vm2, %v3815_v53, %v2003_v52  ;;  %v384_v51 = vsel %vm350_vm2, %v3816_v27, %v2004_v56 }
  0xa6   :  { %v2542_v50 = vpop.permute.xlu0 %2021  ;;  %v1792_v26 = vpack.c.bf16 %v384_v51, %v383_v40  ;;  %v371_v34 = vsel %vm350_vm2, %v2008_v35, %v2018_v18  ;;  %v372_v32 = vsel %vm350_vm2, %v2009_v14, %v2019_v45 }
  0xa7   :  { %v3819_v31 = vunpack.i.h.bf16 %v2542_v50  ;;  %v3820_v48 = vunpack.i.l.bf16 %v2542_v50  ;;  %v2027_v10 = vpop.permute.xlu1 %2026  ;;  %v1828_v53 = vpack.c.bf16 %v372_v32, %v371_v34 }
  0xa8   :  { %1793 = vmatpush1.bf16.msra.mxu0 %v1792_v26  ;;  %v2029_v27 = vunpack.i.h.bf16 %v2027_v10  ;;  %v2028_v49 = vunpack.i.l.bf16 %v2027_v10 }
  0xa9   :  { %v365_v56 = vsel %vm350_vm2, %v2018_v18, %v3820_v48  ;;  %v366_v52 = vsel %vm350_vm2, %v2019_v45, %v3819_v31 }
  0xaa   :  { %v2032_v40 = vpop.permute.xlu0 %2031  ;;  %v1826_v51 = vpack.c.bf16 %v366_v52, %v365_v56 }
  0xab   :  { %v2034_v35 = vunpack.i.h.bf16 %v2032_v40  ;;  %v2033_v19 = vunpack.i.l.bf16 %v2032_v40  ;;  %v2558_v41 = vpop.permute.xlu1 %2036 }
  0xac   :  { %v2039_v14 = vunpack.i.h.bf16 %v2558_v41  ;;  %v2038_v26 = vunpack.i.l.bf16 %v2558_v41  ;;  %1827 = vmatprep.subr.bf16.mxu1 %v1826_v51 }
  0xad   :  { %1829 = vmatpush1.bf16.msra.mxu1 %v1828_v53  ;;  %v379_v18 = vsel %vm350_vm2, %v2028_v49, %v2033_v19  ;;  %v380_v45 = vsel %vm350_vm2, %v2029_v27, %v2034_v35 }
  0xae   :  { %v2042_v56 = vpop.permute.xlu0 %2041  ;;  %v1794_v34 = vpack.c.bf16 %v380_v45, %v379_v18  ;;  %v385_v10 = vsel %vm350_vm2, %v2038_v26, %v2028_v49  ;;  %v386_v32 = vsel %vm350_vm2, %v2039_v14, %v2029_v27  ;;  %v2581_v49 = vld [vmem:[%s3806_s0] sm:$0xff] }
  0xaf   :  { %v2044_v52 = vunpack.i.h.bf16 %v2042_v56  ;;  %v2043_v53 = vunpack.i.l.bf16 %v2042_v56  ;;  %v2574_v40 = vpop.permute.xlu1 %2046  ;;  %v1796_v51 = vpack.c.bf16 %v386_v32, %v385_v10 }
  0xb0   :  { %v2049_v31 = vunpack.i.h.bf16 %v2574_v40  ;;  %v2048_v48 = vunpack.i.l.bf16 %v2574_v40  ;;  %1795 = vmatprep.subr.bf16.mxu0 %v1794_v34 }
  0xb1   :  { %1797 = vmatpush1.bf16.msra.mxu0 %v1796_v51  ;;  %v373_v18 = vsel %vm350_vm2, %v2033_v19, %v2043_v53  ;;  %v374_v27 = vsel %vm350_vm2, %v2034_v35, %v2044_v52 }
  0xb2   :  { %v2052_v45 = vpop.permute.xlu0 %2051  ;;  %v367_v56 = vsel %vm350_vm2, %v2043_v53, %v2048_v48  ;;  %v368_v34 = vsel %vm350_vm2, %v2044_v52, %v2049_v31  ;;  %1835 = vmatprep.subr.bf16.mxu0 %v1834_v59  ;;  %v1832_v10 = vpack.c.bf16 %v374_v27, %v373_v18  ;;  %v2602_v53 = vld [vmem:[%s3806_s0 + $0x18] sm:$0xff]  ;;  %v2113_v27 = vmov 0.0|0.0  }
  0xb3   :  { %v2057_v19 = vpop.permute.xlu1 %2056  ;;  %v1830_v32 = vpack.c.bf16 %v368_v34, %v367_v56  ;;  %v2054_v58 = vunpack.i.h.bf16 %v2052_v45  ;;  %v2053_v59 = vunpack.i.l.bf16 %v2052_v45 }
  0xb4   :  { %v2059_v51 = vunpack.i.h.bf16 %v2057_v19  ;;  %v2058_v35 = vunpack.i.l.bf16 %v2057_v19  ;;  %747 = vmatmul.mubr.f32.vlgmr.msra.gmra.mrb[0].mxu0 %v2581_v49 }
  0xb5   :  { %1831 = vmatprep.subr.bf16.mxu1 %v1830_v32  ;;  %1837 = vmatpush1.bf16.msra.mxu0 %v1836_v61  ;;  %v188_v1 = vsel %vm181_vm1, %v1923_v47, %v2053_v59 }
  0xb6   :  { %v2616_v52 = vsel %vm181_vm1, %v2058_v35, %v1913_v30  ;;  %v2622_v18 = vsel %vm181_vm1, %v2059_v51, %v1914_v29  ;;  %1833 = vmatpush1.bf16.msra.mxu1 %v1832_v10  ;;  %v2062_v12 = vpop.permute.xlu0 %2061  ;;  %1839 = vmatprep.subr.bf16.mxu0 %v1838_v2  ;;  %v182_v29 = vsel %vm181_vm1, %v2053_v59, %v2058_v35 }
  0xb7   :  { %v1880_v15 = vpack.c.bf16 %v2622_v18, %v2616_v52  ;;  %v2067_v61 = vpop.permute.xlu1 %2066  ;;  %1870 = vmatprep.subr.bf16.mxu1 %v2113_v27  ;;  %1667 = vmatprep.mubr.msk.f32.mxu0 %vm609_vm0, %v2602_v53  ;;  %v183_v62 = vsel %vm181_vm1, %v2054_v58, %v2059_v51  ;;  %v2064_v2 = vunpack.i.h.bf16 %v2062_v12  ;;  %v2063_v45 = vunpack.i.l.bf16 %v2062_v12  ;;  %v2794_v52 = vld [vmem:[%s3806_s0 + $0x50] sm:$0xff] }
  0xb8   :  { %v2069_v28 = vunpack.i.h.bf16 %v2067_v61  ;;  %v2068_v30 = vunpack.i.l.bf16 %v2067_v61  ;;  %753 = vmatmul.mubr.f32.gmra.mrb[2].mxu0 %v2610_v57  ;;  %v1846_v0 = vpack.c.bf16 %v183_v62, %v182_v29  ;;  %v3822_v59 = vpack.c.bf16 %v2370_v17, %v2365_v16  ;;  %v2748_v16 = vld [vmem:[%s3806_s0 + $0x40] sm:$0xff] }
  0xb9   :  { %956 = vmatmul.mubr.f32.vlgmr.msra.gmra.mrb[0].mxu1 %v2581_v49  ;;  %1841 = vmatpush1.bf16.msra.mxu0 %v1840_v3  ;;  %v190_v54 = vsel %vm181_vm1, %v1948_v42, %v2063_v45  ;;  %v3824_v62 = vunpack.i.h.bf16 %v2477_v44 }
  0xba   :  { %v2650_v56 = vsel %vm181_vm1, %v2068_v30, %v1938_v25  ;;  %v2656_v34 = vsel %vm181_vm1, %v2069_v28, %v1939_v23  ;;  %1872 = vmatpush1.bf16.msra.mxu1 %v1871_v4  ;;  %v2072_v37 = vpop.permute.xlu0 %2071  ;;  %1691 = vmatprep.mubr.msk.f32.mxu1 %vm609_vm0, %v2602_v53  ;;  %v189_v4 = vsel %vm181_vm1, %v1924_v46, %v2054_v58 }
  0xbb   :  { %v1883_v38 = vpack.c.bf16 %v2656_v34, %v2650_v56  ;;  %v2077_v3 = vpop.permute.xlu1 %2076  ;;  %1843 = vmatprep.subr.bf16.mxu0 %v1842_v9  ;;  %1873 = vmatprep.subr.bf16.mxu1 %v2113_v27  ;;  %v184_v5 = vsel %vm181_vm1, %v2063_v45, %v2068_v30  ;;  %v185_v6 = vsel %vm181_vm1, %v2064_v2, %v2069_v28  ;;  %v2695_v9 = vld [vmem:[%s3806_s0 + $0x38] sm:$0xff]  ;;  %v2074_v43 = vunpack.i.h.bf16 %v2072_v37 }
  0xbc   :  { %1668 = vmatprep.mubr.msk.f32.mxu0 %vm609_vm0, %v2644_v63  ;;  %v2073_v46 = vunpack.i.l.bf16 %v2072_v37  ;;  %v2079_v47 = vunpack.i.h.bf16 %v2077_v3  ;;  %v2078_v23 = vunpack.i.l.bf16 %v2077_v3  ;;  %v1848_v10 = vpack.c.bf16 %v189_v4, %v188_v1  ;;  %v2775_v4 = vld [vmem:[%s3806_s0 + $0x58] sm:$0xff] }
  0xbd   :  { %962 = vmatmul.mubr.f32.gmra.mrb[2].mxu1 %v2610_v57  ;;  %1845 = vmatpush1.bf16.msra.mxu0 %v1844_v11  ;;  %v1850_v8 = vpack.c.bf16 %v185_v6, %v184_v5  ;;  %v3821_v11 = vunpack.i.h.bf16 %v2445_v39  ;;  %v2729_v39 = vld [vmem:[%s3806_s0 + $0x48] sm:$0xff]  ;;  %v3823_v28 = vunpack.i.l.bf16 %v2477_v44  ;;  %v3825_v3 = vunpack.i.h.bf16 %v2461_v20 }
  0xbe   :  { %1875 = vmatpush1.bf16.msra.mxu1 %v1874_v13  ;;  %v2082_v25 = vpop.permute.xlu0 %2081  ;;  %759 = vmatmul.mubr.f32.gmra.mrb[4].mxu0 %v2672_v22  ;;  %v186_v42 = vsel %vm181_vm1, %v2073_v46, %v2078_v23  ;;  %v187_v19 = vsel %vm181_vm1, %v2074_v43, %v2079_v47  ;;  %v3830_v56 = vunpack.i.h.bf16 %v2542_v50 }
  0xbf   :  { %v2705_v55 = vpop.permute.xlu1 %2086  ;;  %1692 = vmatprep.mubr.msk.f32.mxu1 %vm609_vm0, %v2644_v63  ;;  %1847 = vmatprep.subr.bf16.mxu0 %v1846_v0  ;;  %v191_v13 = vsel %vm181_vm1, %v3821_v11, %v2064_v2  ;;  %v2084_v32 = vunpack.i.h.bf16 %v2082_v25  ;;  %v2083_v51 = vunpack.i.l.bf16 %v2082_v25  ;;  %v192_v30 = vsel %vm181_vm1, %v3823_v28, %v2073_v46  ;;  %v2828_v28 = vld [vmem:[%s3806_s0 + $0x60] sm:$0xff] }
  0xc0   :  { %1876 = vmatprep.subr.bf16.mxu1 %v2113_v27  ;;  %1669 = vmatprep.mubr.msk.f32.mxu0 %vm609_vm0, %v2695_v9  ;;  %v2089_v35 = vunpack.i.h.bf16 %v2705_v55  ;;  %v2088_v58 = vunpack.i.l.bf16 %v2705_v55  ;;  %v1852_v61 = vpack.c.bf16 %v191_v13, %v190_v54  ;;  %v1854_v17 = vpack.c.bf16 %v187_v19, %v186_v42 }
  0xc1   :  { %968 = vmatmul.mubr.f32.gmra.mrb[4].mxu1 %v2672_v22  ;;  %1849 = vmatpush1.bf16.msra.mxu0 %v1848_v10  ;;  %v193_v2 = vsel %vm181_vm1, %v3824_v62, %v2074_v43  ;;  %v223_v44 = vsel %vm181_vm1, %v2079_v47, %v3825_v3  ;;  %v3826_v0 = vunpack.i.l.bf16 %v2461_v20  ;;  %v3827_v47 = vunpack.i.l.bf16 %v2510_v21 }
  0xc2   :  { %1878 = vmatpush1.bf16.msra.mxu1 %v3822_v59  ;;  %v2092_v12 = vpop.permute.xlu0 %2091  ;;  %765 = vmatmul.mubr.f32.gmra.mrb[6].mxu0 %v2712_v7  ;;  %v351_v45 = vsel %vm350_vm2, %v2083_v51, %v2088_v58  ;;  %v352_v37 = vsel %vm350_vm2, %v2084_v32, %v2089_v35  ;;  %v1856_v20 = vpack.c.bf16 %v193_v2, %v192_v30 }
  0xc3   :  { %v2741_v29 = vpop.permute.xlu1 %2096  ;;  %1693 = vmatprep.mubr.msk.f32.mxu1 %vm609_vm0, %v2695_v9  ;;  %1851 = vmatprep.subr.bf16.mxu0 %v1850_v8  ;;  %v222_v1 = vsel %vm181_vm1, %v2078_v23, %v3826_v0  ;;  %v2094_v5 = vunpack.i.h.bf16 %v2092_v12  ;;  %v2093_v6 = vunpack.i.l.bf16 %v2092_v12  ;;  %v357_v23 = vsel %vm350_vm2, %v3827_v47, %v2083_v51  ;;  %v2961_v47 = vld [vmem:[%s3806_s0 + $0xc8] sm:$0xff] }
  0xc4   :  { %1879 = vmatprep.subr.bf16.mxu1 %v2113_v27  ;;  %1670 = vmatprep.mubr.msk.f32.mxu0 %vm609_vm0, %v2729_v39  ;;  %v2099_v43 = vunpack.i.h.bf16 %v2741_v29  ;;  %v2098_v46 = vunpack.i.l.bf16 %v2741_v29  ;;  %v1858_v18 = vpack.c.bf16 %v352_v37, %v351_v45  ;;  %v1886_v13 = vpack.c.bf16 %v223_v44, %v222_v1  ;;  %v2855_v45 = vld [vmem:[%s3806_s0 + $0x78] sm:$0xff] }
  0xc5   :  { %974 = vmatmul.mubr.f32.gmra.mrb[6].mxu1 %v2712_v7  ;;  %1853 = vmatpush1.bf16.msra.mxu0 %v1852_v61  ;;  %v3829_v12 = vunpack.i.l.bf16 %v2542_v50  ;;  %v360_v34 = vsel %vm350_vm2, %v3830_v56, %v2094_v5  ;;  %v3832_v50 = vunpack.i.h.bf16 %v2494_v36  ;;  %v3833_v44 = vunpack.i.h.bf16 %v2526_v33  ;;  %v3105_v56 = vld [vmem:[%s3806_s0 + $0x158] sm:$0xff] }
  0xc6   :  { %1881 = vmatpush1.bf16.msra.mxu1 %v1880_v15  ;;  %771 = vmatmul.mubr.f32.gmra.mrb[8].mxu0 %v2748_v16  ;;  %v2102_v25 = vpop.permute.xlu0 %2101  ;;  %v3828_v15 = vunpack.i.h.bf16 %v2510_v21  ;;  %v353_v8 = vsel %vm350_vm2, %v2093_v6, %v2098_v46  ;;  %v354_v11 = vsel %vm350_vm2, %v2094_v5, %v2099_v43  ;;  %v2811_v21 = vld [vmem:[%s3806_s0 + $0x68] sm:$0xff]  ;;  %v3834_v1 = vunpack.i.l.bf16 %v2526_v33  ;;  %v2896_v33 = vld [vmem:[%s3806_s0 + $0x80] sm:$0xff] }
  0xc7   :  { %v2787_v10 = vpop.permute.xlu1 %2106  ;;  %1694 = vmatprep.mubr.msk.f32.mxu1 %vm609_vm0, %v2729_v39  ;;  %1855 = vmatprep.subr.bf16.mxu0 %v1854_v17  ;;  %v2104_v42 = vunpack.i.h.bf16 %v2102_v25  ;;  %v2103_v19 = vunpack.i.l.bf16 %v2102_v25  ;;  %v359_v61 = vsel %vm350_vm2, %v3829_v12, %v2093_v6  ;;  %v1862_v30 = vpack.c.bf16 %v354_v11, %v353_v8  ;;  %v2977_v25 = vld [vmem:[%s3806_s0 + $0xd8] sm:$0xff]  ;;  %v3020_v8 = vld [vmem:[%s3806_s0 + $0xf0] sm:$0xff]  ;;  %v3025_v11 = vld [vmem:[%s3806_s0 + $0x108] sm:$0xff] }
  0xc8   :  { %v358_v54 = vsel %vm350_vm2, %v3828_v15, %v2084_v32  ;;  %1882 = vmatprep.subr.bf16.mxu1 %v2113_v27  ;;  %1671 = vmatprep.mubr.msk.f32.mxu0 %vm609_vm0, %v2775_v4  ;;  %v2109_v32 = vunpack.i.h.bf16 %v2787_v10  ;;  %v2108_v51 = vunpack.i.l.bf16 %v2787_v10  ;;  %v3831_v17 = vunpack.i.l.bf16 %v2494_v36  ;;  %v2863_v36 = vld [vmem:[%s3806_s0 + $0x70] sm:$0xff]  ;;  %v3004_v15 = vld [vmem:[%s3806_s0 + $0xe0] sm:$0xff] }
  0xc9   :  { %980 = vmatmul.mubr.f32.gmra.mrb[8].mxu1 %v2748_v16  ;;  %1857 = vmatpush1.bf16.msra.mxu0 %v1856_v20  ;;  %v1860_v59 = vpack.c.bf16 %v358_v54, %v357_v23  ;;  %v388_v2 = vsel %vm350_vm2, %v2089_v35, %v3832_v50  ;;  %v1864_v37 = vpack.c.bf16 %v360_v34, %v359_v61  ;;  %v2956_v20 = vld [vmem:[%s3806_s0 + $0xb0] sm:$0xff]  ;;  %v2972_v23 = vld [vmem:[%s3806_s0 + $0xc0] sm:$0xff]  ;;  %v3009_v54 = vld [vmem:[%s3806_s0 + $0xf8] sm:$0xff] }
  0xca   :  { %1884 = vmatpush1.bf16.msra.mxu1 %v1883_v38  ;;  %777 = vmatmul.mubr.f32.gmra.mrb[10].mxu0 %v2794_v52  ;;  %v355_v38 = vsel %vm350_vm2, %v2103_v19, %v2108_v51  ;;  %v356_v29 = vsel %vm350_vm2, %v2104_v42, %v2109_v32  ;;  %v387_v62 = vsel %vm350_vm2, %v2088_v58, %v3831_v17  ;;  %v2988_v10 = vld [vmem:[%s3806_s0 + $0xd0] sm:$0xff]  ;;  %v3089_v61 = vld [vmem:[%s3806_s0 + $0x148] sm:$0xff]  ;;  %v3137_v17 = vld [vmem:[%s3806_s0 + $0x178] sm:$0xff] }
  0xcb   :  { %1695 = vmatprep.mubr.msk.f32.mxu1 %vm609_vm0, %v2775_v4  ;;  %1859 = vmatprep.subr.bf16.mxu0 %v1858_v18  ;;  %v1866_v55 = vpack.c.bf16 %v356_v29, %v355_v38  ;;  %v1889_v35 = vpack.c.bf16 %v388_v2, %v387_v62  ;;  %v361_v58 = vsel %vm350_vm2, %v2048_v48, %v2103_v19  ;;  %v2993_v18 = vld [vmem:[%s3806_s0 + $0xe8] sm:$0xff]  ;;  %v3052_v19 = vld [vmem:[%s3806_s0 + $0x110] sm:$0xff]  ;;  %v3132_v29 = vld [vmem:[%s3806_s0 + $0x160] sm:$0xff] }
  0xcc   :  { %1885 = vmatprep.subr.bf16.mxu1 %v2113_v27  ;;  %1672 = vmatprep.mubr.msk.f32.mxu0 %vm609_vm0, %v2811_v21  ;;  %v362_v3 = vsel %vm350_vm2, %v2049_v31, %v2104_v42  ;;  %v390_v0 = vsel %vm350_vm2, %v2099_v43, %v3833_v44  ;;  %v389_v48 = vsel %vm350_vm2, %v2098_v46, %v3834_v1  ;;  %v2888_v31 = vld [vmem:[%s3806_s0 + $0x88] sm:$0xff]  ;;  %v2913_v46 = vld [vmem:[%s3806_s0 + $0x98] sm:$0xff]  ;;  %v3084_v12 = vld [vmem:[%s3806_s0 + $0x130] sm:$0xff] }
  0xcd   :  { %986 = vmatmul.mubr.f32.gmra.mrb[10].mxu1 %v2794_v52  ;;  %1861 = vmatpush1.bf16.msra.mxu0 %v1860_v59  ;;  %v1868_v40 = vpack.c.bf16 %v362_v3, %v361_v58  ;;  %v1892_v5 = vpack.c.bf16 %v390_v0, %v389_v48  ;;  %v391_v6 = vsel %vm350_vm2, %v2108_v51, %v2038_v26  ;;  %v2940_v26 = vld [vmem:[%s3806_s0 + $0xa0] sm:$0xff]  ;;  %v3041_v42 = vld [vmem:[%s3806_s0 + $0x118] sm:$0xff]  ;;  %v3116_v34 = vld [vmem:[%s3806_s0 + $0x150] sm:$0xff] }
  0xce   :  { %1887 = vmatpush1.bf16.msra.mxu1 %v1886_v13  ;;  %783 = vmatmul.mubr.f32.gmra.mrb[12].mxu0 %v2828_v28  ;;  %v392_v43 = vsel %vm350_vm2, %v2109_v32, %v2039_v14  ;;  %v2929_v14 = vld [vmem:[%s3806_s0 + $0xa8] sm:$0xff]  ;;  %v3036_v13 = vld [vmem:[%s3806_s0 + $0x100] sm:$0xff]  ;;  %v3073_v59 = vld [vmem:[%s3806_s0 + $0x138] sm:$0xff] }
  0xcf   :  { %1696 = vmatprep.mubr.msk.f32.mxu1 %vm609_vm0, %v2811_v21  ;;  %1863 = vmatprep.subr.bf16.mxu0 %v1862_v30  ;;  %v1895_v41 = vpack.c.bf16 %v392_v43, %v391_v6  ;;  %v3057_v32 = vld [vmem:[%s3806_s0 + $0x128] sm:$0xff]  ;;  %v3068_v51 = vld [vmem:[%s3806_s0 + $0x120] sm:$0xff]  ;;  %v3148_v62 = vld [vmem:[%s3806_s0 + $0x170] sm:$0xff] }
  0xd0   :  { %1888 = vmatprep.subr.bf16.mxu1 %v2113_v27  ;;  %1673 = vmatprep.mubr.msk.f32.mxu0 %vm609_vm0, %v2855_v45  ;;  %v3100_v30 = vld [vmem:[%s3806_s0 + $0x140] sm:$0xff]  ;;  %v3121_v38 = vld [vmem:[%s3806_s0 + $0x168] sm:$0xff] }
  0xd1   :  { %992 = vmatmul.mubr.f32.gmra.mrb[12].mxu1 %v2828_v28  ;;  %1865 = vmatpush1.bf16.msra.mxu0 %v1864_v37  ;;  %v2110_v50 = vld [vmem:[%s3806_s0 + $0x8] sm:$0xff] }
  0xd2   :  { %1890 = vmatpush1.bf16.msra.mxu1 %v1889_v35  ;;  %789 = vmatmul.mubr.f32.gmra.mrb[14].mxu0 %v2863_v36 }
  0xd3   :  { %1697 = vmatprep.mubr.msk.f32.mxu1 %vm609_vm0, %v2855_v45  ;;  %1867 = vmatprep.subr.bf16.mxu0 %v1866_v55 }
  0xd4   :  { %1891 = vmatprep.subr.bf16.mxu1 %v2113_v27  ;;  %1674 = vmatprep.mubr.msk.f32.mxu0 %vm609_vm0, %v2888_v31 }
  0xd5   :  { %998 = vmatmul.mubr.f32.gmra.mrb[14].mxu1 %v2863_v36  ;;  %1869 = vmatpush1.bf16.msra.mxu0 %v1868_v40 }
  0xd6   :  { %1893 = vmatpush1.bf16.msra.mxu1 %v1892_v5  ;;  %795 = vmatmul.mubr.f32.gmra.mrb[16].mxu0 %v2896_v33 }
  0xd7   :  { %1698 = vmatprep.mubr.msk.f32.mxu1 %vm609_vm0, %v2888_v31  ;;  %1894 = vmatprep.subr.bf16.mxu1 %v2113_v27  ;;  %v2945_v27 = vld [vmem:[%s3806_s0 + $0xb8] sm:$0xff] }
  0xd8   :  { %1675 = vmatprep.mubr.msk.f32.mxu0 %vm609_vm0, %v2913_v46 }
  0xd9   :  { %1004 = vmatmul.mubr.f32.gmra.mrb[16].mxu1 %v2896_v33 }
  0xda   :  { %1896 = vmatpush1.bf16.msra.mxu1 %v1895_v41  ;;  %801 = vmatmul.mubr.f32.gmra.mrb[18].mxu0 %v2922_v24 }
  0xdb   :  { %1699 = vmatprep.mubr.msk.f32.mxu1 %vm609_vm0, %v2913_v46  ;;  %1676 = vmatprep.mubr.msk.f32.mxu0 %vm609_vm0, %v2929_v14 }
  0xdd   :  { %1010 = vmatmul.mubr.f32.gmra.mrb[18].mxu1 %v2922_v24 }
  0xde   :  { %807 = vmatmul.mubr.f32.gmra.mrb[20].mxu0 %v2940_v26  ;;  %1700 = vmatprep.mubr.msk.f32.mxu1 %vm609_vm0, %v2929_v14 }
  0xdf   :  { %1677 = vmatprep.mubr.msk.f32.mxu0 %vm609_vm0, %v2945_v27 }
  0xe1   :  { %1016 = vmatmul.mubr.f32.gmra.mrb[20].mxu1 %v2940_v26 }
  0xe2   :  { %813 = vmatmul.mubr.f32.gmra.mrb[22].mxu0 %v2956_v20  ;;  %1701 = vmatprep.mubr.msk.f32.mxu1 %vm609_vm0, %v2945_v27 }
  0xe3   :  { %1678 = vmatprep.mubr.msk.f32.mxu0 %vm609_vm0, %v2961_v47 }
  0xe5   :  { %1022 = vmatmul.mubr.f32.gmra.mrb[22].mxu1 %v2956_v20 }
  0xe6   :  { %819 = vmatmul.mubr.f32.gmra.mrb[24].mxu0 %v2972_v23  ;;  %1702 = vmatprep.mubr.msk.f32.mxu1 %vm609_vm0, %v2961_v47 }
  0xe7   :  { %1679 = vmatprep.mubr.msk.f32.mxu0 %vm609_vm0, %v2977_v25 }
  0xe9   :  { %1028 = vmatmul.mubr.f32.gmra.mrb[24].mxu1 %v2972_v23 }
  0xea   :  { %825 = vmatmul.mubr.f32.gmra.mrb[26].mxu0 %v2988_v10  ;;  %1703 = vmatprep.mubr.msk.f32.mxu1 %vm609_vm0, %v2977_v25 }
  0xeb   :  { %1680 = vmatprep.mubr.msk.f32.mxu0 %vm609_vm0, %v2993_v18 }
  0xed   :  { %1034 = vmatmul.mubr.f32.gmra.mrb[26].mxu1 %v2988_v10 }
  0xee   :  { %831 = vmatmul.mubr.f32.gmra.mrb[28].mxu0 %v3004_v15  ;;  %1704 = vmatprep.mubr.msk.f32.mxu1 %vm609_vm0, %v2993_v18 }
  0xef   :  { %1681 = vmatprep.mubr.msk.f32.mxu0 %vm609_vm0, %v3009_v54 }
  0xf1   :  { %1040 = vmatmul.mubr.f32.gmra.mrb[28].mxu1 %v3004_v15 }
  0xf2   :  { %837 = vmatmul.mubr.f32.gmra.mrb[30].mxu0 %v3020_v8  ;;  %1705 = vmatprep.mubr.msk.f32.mxu1 %vm609_vm0, %v3009_v54 }
  0xf3   :  { %1682 = vmatprep.mubr.msk.f32.mxu0 %vm609_vm0, %v3025_v11 }
  0xf5   :  { %1046 = vmatmul.mubr.f32.gmra.mrb[30].mxu1 %v3020_v8 }
  0xf6   :  { %843 = vmatmul.mubr.f32.gmra.mrb[32].mxu0 %v3036_v13  ;;  %1706 = vmatprep.mubr.msk.f32.mxu1 %vm609_vm0, %v3025_v11 }
  0xf7   :  { %1683 = vmatprep.mubr.msk.f32.mxu0 %vm609_vm0, %v3041_v42 }
  0xf9   :  { %1052 = vmatmul.mubr.f32.gmra.mrb[32].mxu1 %v3036_v13 }
  0xfa   :  { %849 = vmatmul.mubr.f32.gmra.mrb[34].mxu0 %v3052_v19  ;;  %1707 = vmatprep.mubr.msk.f32.mxu1 %vm609_vm0, %v3041_v42 }
  0xfb   :  { %1684 = vmatprep.mubr.msk.f32.mxu0 %vm609_vm0, %v3057_v32 }
  0xfd   :  { %1058 = vmatmul.mubr.f32.gmra.mrb[34].mxu1 %v3052_v19 }
  0xfe   :  { %855 = vmatmul.mubr.f32.gmra.mrb[36].mxu0 %v3068_v51  ;;  %1708 = vmatprep.mubr.msk.f32.mxu1 %vm609_vm0, %v3057_v32 }
  0xff   :  { %1685 = vmatprep.mubr.msk.f32.mxu0 %vm609_vm0, %v3073_v59 }
 0x101   :  { %1064 = vmatmul.mubr.f32.gmra.mrb[36].mxu1 %v3068_v51 }
 0x102   :  { %861 = vmatmul.mubr.f32.gmra.mrb[38].mxu0 %v3084_v12  ;;  %1709 = vmatprep.mubr.msk.f32.mxu1 %vm609_vm0, %v3073_v59 }
 0x103   :  { %1686 = vmatprep.mubr.msk.f32.mxu0 %vm609_vm0, %v3089_v61 }
 0x105   :  { %1070 = vmatmul.mubr.f32.gmra.mrb[38].mxu1 %v3084_v12 }
 0x106   :  { %867 = vmatmul.mubr.f32.gmra.mrb[40].mxu0 %v3100_v30  ;;  %1710 = vmatprep.mubr.msk.f32.mxu1 %vm609_vm0, %v3089_v61 }
 0x107   :  { %1687 = vmatprep.mubr.msk.f32.mxu0 %vm609_vm0, %v3105_v56 }
 0x109   :  { %1076 = vmatmul.mubr.f32.gmra.mrb[40].mxu1 %v3100_v30 }
 0x10a   :  { %873 = vmatmul.mubr.f32.gmra.mrb[42].mxu0 %v3116_v34  ;;  %1711 = vmatprep.mubr.msk.f32.mxu1 %vm609_vm0, %v3105_v56 }
 0x10b   :  { %1688 = vmatprep.mubr.msk.f32.mxu0 %vm609_vm0, %v3121_v38 }
 0x10d   :  { %1082 = vmatmul.mubr.f32.gmra.mrb[42].mxu1 %v3116_v34 }
 0x10e   :  { %879 = vmatmul.mubr.f32.gmra.mrb[44].mxu0 %v3132_v29  ;;  %1712 = vmatprep.mubr.msk.f32.mxu1 %vm609_vm0, %v3121_v38 }
 0x10f   :  { %1689 = vmatprep.mubr.msk.f32.mxu0 %vm609_vm0, %v3137_v17 }
 0x111   :  { %1088 = vmatmul.mubr.f32.gmra.mrb[44].mxu1 %v3132_v29 }
 0x112   :  { %885 = vmatmul.mubr.f32.gmra.mrb[46].mxu0 %v3148_v62  ;;  %1713 = vmatprep.mubr.msk.f32.mxu1 %vm609_vm0, %v3137_v17 }
 0x113   :  { %1714 = vmatprep.mubr.msk.f32.mxu0 %vm609_vm0, %v2293_v60 }
 0x115   :  { %1094 = vmatmul.mubr.f32.gmra.mrb[46].mxu1 %v3148_v62 }
 0x116   :  { %1165 = vmatmul.mubr.f32.vlgmr.msra.gmra.mrb[48].mxu0 %v2581_v49  ;;  %1738 = vmatprep.mubr.msk.f32.mxu1 %vm609_vm0, %v2110_v50 }
 0x117   :  { %1715 = vmatprep.mubr.msk.f32.mxu0 %vm609_vm0, %v2602_v53 }
 0x119   :  { %1374 = vmatmul.mubr.f32.vlgmr.msra.gmra.mrb[48].mxu1 %v2581_v49 }
 0x11a   :  { %1171 = vmatmul.mubr.f32.gmra.mrb[50].mxu0 %v2610_v57  ;;  %1739 = vmatprep.mubr.msk.f32.mxu1 %vm609_vm0, %v2602_v53 }
 0x11b   :  { %1716 = vmatprep.mubr.msk.f32.mxu0 %vm609_vm0, %v2644_v63 }
 0x11d   :  { %1379 = vmatmul.mubr.f32.gmra.mrb[50].mxu1 %v2610_v57 }
 0x11e   :  { %1177 = vmatmul.mubr.f32.gmra.mrb[52].mxu0 %v2672_v22  ;;  %1740 = vmatprep.mubr.msk.f32.mxu1 %vm609_vm0, %v2644_v63 }
 0x11f   :  { %1717 = vmatprep.mubr.msk.f32.mxu0 %vm609_vm0, %v2695_v9 }
 0x121   :  { %1384 = vmatmul.mubr.f32.gmra.mrb[52].mxu1 %v2672_v22 }
 0x122   :  { %1183 = vmatmul.mubr.f32.gmra.mrb[54].mxu0 %v2712_v7  ;;  %1741 = vmatprep.mubr.msk.f32.mxu1 %vm609_vm0, %v2695_v9 }
 0x123   :  { %1718 = vmatprep.mubr.msk.f32.mxu0 %vm609_vm0, %v2729_v39 }
 0x125   :  { %1389 = vmatmul.mubr.f32.gmra.mrb[54].mxu1 %v2712_v7 }
 0x126   :  { %1189 = vmatmul.mubr.f32.gmra.mrb[56].mxu0 %v2748_v16  ;;  %1742 = vmatprep.mubr.msk.f32.mxu1 %vm609_vm0, %v2729_v39 }
 0x127   :  { %1719 = vmatprep.mubr.msk.f32.mxu0 %vm609_vm0, %v2775_v4 }
 0x129   :  { %1394 = vmatmul.mubr.f32.gmra.mrb[56].mxu1 %v2748_v16 }
 0x12a   :  { %1195 = vmatmul.mubr.f32.gmra.mrb[58].mxu0 %v2794_v52  ;;  %1743 = vmatprep.mubr.msk.f32.mxu1 %vm609_vm0, %v2775_v4 }
 0x12b   :  { %1720 = vmatprep.mubr.msk.f32.mxu0 %vm609_vm0, %v2811_v21 }
 0x12d   :  { %1399 = vmatmul.mubr.f32.gmra.mrb[58].mxu1 %v2794_v52 }
 0x12e   :  { %1201 = vmatmul.mubr.f32.gmra.mrb[60].mxu0 %v2828_v28  ;;  %1744 = vmatprep.mubr.msk.f32.mxu1 %vm609_vm0, %v2811_v21 }
 0x12f   :  { %1721 = vmatprep.mubr.msk.f32.mxu0 %vm609_vm0, %v2855_v45 }
 0x131   :  { %1404 = vmatmul.mubr.f32.gmra.mrb[60].mxu1 %v2828_v28 }
 0x132   :  { %1207 = vmatmul.mubr.f32.gmra.mrb[62].mxu0 %v2863_v36  ;;  %1745 = vmatprep.mubr.msk.f32.mxu1 %vm609_vm0, %v2855_v45 }
 0x133   :  { %1722 = vmatprep.mubr.msk.f32.mxu0 %vm609_vm0, %v2888_v31 }
 0x135   :  { %1409 = vmatmul.mubr.f32.gmra.mrb[62].mxu1 %v2863_v36 }
 0x136   :  { %1213 = vmatmul.mubr.f32.gmra.mrb[64].mxu0 %v2896_v33  ;;  %1746 = vmatprep.mubr.msk.f32.mxu1 %vm609_vm0, %v2888_v31 }
 0x137   :  { %1723 = vmatprep.mubr.msk.f32.mxu0 %vm609_vm0, %v2913_v46 }
 0x139   :  { %1414 = vmatmul.mubr.f32.gmra.mrb[64].mxu1 %v2896_v33 }
 0x13a   :  { %1219 = vmatmul.mubr.f32.gmra.mrb[66].mxu0 %v2922_v24  ;;  %1747 = vmatprep.mubr.msk.f32.mxu1 %vm609_vm0, %v2913_v46 }
 0x13b   :  { %1724 = vmatprep.mubr.msk.f32.mxu0 %vm609_vm0, %v2929_v14 }
 0x13d   :  { %1419 = vmatmul.mubr.f32.gmra.mrb[66].mxu1 %v2922_v24 }
 0x13e   :  { %1225 = vmatmul.mubr.f32.gmra.mrb[68].mxu0 %v2940_v26  ;;  %1748 = vmatprep.mubr.msk.f32.mxu1 %vm609_vm0, %v2929_v14 }
 0x13f   :  { %1725 = vmatprep.mubr.msk.f32.mxu0 %vm609_vm0, %v2945_v27 }
 0x141   :  { %1424 = vmatmul.mubr.f32.gmra.mrb[68].mxu1 %v2940_v26 }
 0x142   :  { %1231 = vmatmul.mubr.f32.gmra.mrb[70].mxu0 %v2956_v20  ;;  %1749 = vmatprep.mubr.msk.f32.mxu1 %vm609_vm0, %v2945_v27 }
 0x143   :  { %1726 = vmatprep.mubr.msk.f32.mxu0 %vm609_vm0, %v2961_v47 }
 0x145   :  { %1429 = vmatmul.mubr.f32.gmra.mrb[70].mxu1 %v2956_v20 }
 0x146   :  { %1237 = vmatmul.mubr.f32.gmra.mrb[72].mxu0 %v2972_v23  ;;  %1750 = vmatprep.mubr.msk.f32.mxu1 %vm609_vm0, %v2961_v47 }
 0x147   :  { %1727 = vmatprep.mubr.msk.f32.mxu0 %vm609_vm0, %v2977_v25 }
 0x149   :  { %1434 = vmatmul.mubr.f32.gmra.mrb[72].mxu1 %v2972_v23 }
 0x14a   :  { %1243 = vmatmul.mubr.f32.gmra.mrb[74].mxu0 %v2988_v10  ;;  %1751 = vmatprep.mubr.msk.f32.mxu1 %vm609_vm0, %v2977_v25 }
 0x14b   :  { %1728 = vmatprep.mubr.msk.f32.mxu0 %vm609_vm0, %v2993_v18 }
 0x14d   :  { %1439 = vmatmul.mubr.f32.gmra.mrb[74].mxu1 %v2988_v10 }
 0x14e   :  { %1249 = vmatmul.mubr.f32.gmra.mrb[76].mxu0 %v3004_v15  ;;  %1752 = vmatprep.mubr.msk.f32.mxu1 %vm609_vm0, %v2993_v18 }
 0x14f   :  { %1729 = vmatprep.mubr.msk.f32.mxu0 %vm609_vm0, %v3009_v54 }
 0x151   :  { %1444 = vmatmul.mubr.f32.gmra.mrb[76].mxu1 %v3004_v15 }
 0x152   :  { %1255 = vmatmul.mubr.f32.gmra.mrb[78].mxu0 %v3020_v8  ;;  %1753 = vmatprep.mubr.msk.f32.mxu1 %vm609_vm0, %v3009_v54 }
 0x153   :  { %1730 = vmatprep.mubr.msk.f32.mxu0 %vm609_vm0, %v3025_v11 }
 0x155   :  { %1449 = vmatmul.mubr.f32.gmra.mrb[78].mxu1 %v3020_v8 }
 0x156   :  { %1261 = vmatmul.mubr.f32.gmra.mrb[80].mxu0 %v3036_v13  ;;  %1754 = vmatprep.mubr.msk.f32.mxu1 %vm609_vm0, %v3025_v11 }
 0x157   :  { %1731 = vmatprep.mubr.msk.f32.mxu0 %vm609_vm0, %v3041_v42 }
 0x159   :  { %1454 = vmatmul.mubr.f32.gmra.mrb[80].mxu1 %v3036_v13 }
 0x15a   :  { %1267 = vmatmul.mubr.f32.gmra.mrb[82].mxu0 %v3052_v19  ;;  %1755 = vmatprep.mubr.msk.f32.mxu1 %vm609_vm0, %v3041_v42 }
 0x15b   :  { %1732 = vmatprep.mubr.msk.f32.mxu0 %vm609_vm0, %v3057_v32 }
 0x15d   :  { %1459 = vmatmul.mubr.f32.gmra.mrb[82].mxu1 %v3052_v19 }
 0x15e   :  { %1273 = vmatmul.mubr.f32.gmra.mrb[84].mxu0 %v3068_v51  ;;  %1756 = vmatprep.mubr.msk.f32.mxu1 %vm609_vm0, %v3057_v32 }
 0x15f   :  { %1733 = vmatprep.mubr.msk.f32.mxu0 %vm609_vm0, %v3073_v59 }
 0x161   :  { %1464 = vmatmul.mubr.f32.gmra.mrb[84].mxu1 %v3068_v51 }
 0x162   :  { %1279 = vmatmul.mubr.f32.gmra.mrb[86].mxu0 %v3084_v12  ;;  %1757 = vmatprep.mubr.msk.f32.mxu1 %vm609_vm0, %v3073_v59 }
 0x163   :  { %1734 = vmatprep.mubr.msk.f32.mxu0 %vm609_vm0, %v3089_v61 }
 0x165   :  { %1469 = vmatmul.mubr.f32.gmra.mrb[86].mxu1 %v3084_v12 }
 0x166   :  { %1285 = vmatmul.mubr.f32.gmra.mrb[88].mxu0 %v3100_v30  ;;  %1758 = vmatprep.mubr.msk.f32.mxu1 %vm609_vm0, %v3089_v61 }
 0x167   :  { %1735 = vmatprep.mubr.msk.f32.mxu0 %vm609_vm0, %v3105_v56 }
 0x169   :  { %1474 = vmatmul.mubr.f32.gmra.mrb[88].mxu1 %v3100_v30 }
 0x16a   :  { %1291 = vmatmul.mubr.f32.gmra.mrb[90].mxu0 %v3116_v34  ;;  %1759 = vmatprep.mubr.msk.f32.mxu1 %vm609_vm0, %v3105_v56 }
 0x16b   :  { %1736 = vmatprep.mubr.msk.f32.mxu0 %vm609_vm0, %v3121_v38 }
 0x16d   :  { %1479 = vmatmul.mubr.f32.gmra.mrb[90].mxu1 %v3116_v34 }
 0x16e   :  { %1297 = vmatmul.mubr.f32.gmra.mrb[92].mxu0 %v3132_v29  ;;  %1760 = vmatprep.mubr.msk.f32.mxu1 %vm609_vm0, %v3121_v38 }
 0x16f   :  { %1737 = vmatprep.mubr.msk.f32.mxu0 %vm609_vm0, %v3137_v17 }
 0x171   :  { %1484 = vmatmul.mubr.f32.gmra.mrb[92].mxu1 %v3132_v29 }
 0x172   :  { %1303 = vmatmul.mubr.f32.gmra.mrb[94].mxu0 %v3148_v62  ;;  %1761 = vmatprep.mubr.msk.f32.mxu1 %vm609_vm0, %v3137_v17 }
 0x175   :  { %1489 = vmatmul.mubr.f32.gmra.mrb[94].mxu1 %v3148_v62 }
 0x187   :  { %v748_v60 = vpop.f32.mrb[0].mxu0 }
 0x188   :  { %1494 = vst [vmem:[%s3807_s2] sm:$0xff] %v748_v60  ;;  %v750_v49 = vpop.f32.mrb[1].mxu0 }
 0x189   :  { %1495 = vst [vmem:[%s3807_s2 + $0x8] sm:$0xff] %v750_v49 }
 0x18b   :  { %v754_v53 = vpop.f32.mrb[2].mxu0 }
 0x18c   :  { %v957_v57 = vpop.f32.mrb[0].mxu1  ;;  %1501 = vst [vmem:[%s3807_s2 + $0x38] sm:$0xff] %v754_v53  ;;  %v756_v63 = vpop.f32.mrb[3].mxu0 }
 0x18d   :  { %1496 = vst [vmem:[%s3807_s2 + $0x10] sm:$0xff] %v957_v57  ;;  %v959_v22 = vpop.f32.mrb[1].mxu1  ;;  %1502 = vst [vmem:[%s3807_s2 + $0x40] sm:$0xff] %v756_v63 }
 0x18e   :  { %1497 = vst [vmem:[%s3807_s2 + $0x18] sm:$0xff] %v959_v22 }
 0x190   :  { %v963_v9 = vpop.f32.mrb[2].mxu1 }
 0x191   :  { %1503 = vst [vmem:[%s3807_s2 + $0x48] sm:$0xff] %v963_v9  ;;  %v965_v7 = vpop.f32.mrb[3].mxu1  ;;  %v760_v39 = vpop.f32.mrb[4].mxu0 }
 0x192   :  { %1504 = vst [vmem:[%s3807_s2 + $0x50] sm:$0xff] %v965_v7  ;;  %1508 = vst [vmem:[%s3807_s2 + $0x70] sm:$0xff] %v760_v39  ;;  %v762_v16 = vpop.f32.mrb[5].mxu0 }
 0x193   :  { %1509 = vst [vmem:[%s3807_s2 + $0x78] sm:$0xff] %v762_v16 }
 0x194   :  { %v969_v4 = vpop.f32.mrb[4].mxu1 }
 0x195   :  { %1510 = vst [vmem:[%s3807_s2 + $0x80] sm:$0xff] %v969_v4  ;;  %v971_v52 = vpop.f32.mrb[5].mxu1  ;;  %v766_v21 = vpop.f32.mrb[6].mxu0 }
 0x196   :  { %1511 = vst [vmem:[%s3807_s2 + $0x88] sm:$0xff] %v971_v52  ;;  %1515 = vst [vmem:[%s3807_s2 + $0xa8] sm:$0xff] %v766_v21  ;;  %v768_v28 = vpop.f32.mrb[7].mxu0 }
 0x197   :  { %1516 = vst [vmem:[%s3807_s2 + $0xb0] sm:$0xff] %v768_v28 }
 0x198   :  { %v975_v2 = vpop.f32.mrb[6].mxu1 }
 0x199   :  { %1517 = vst [vmem:[%s3807_s2 + $0xb8] sm:$0xff] %v975_v2  ;;  %v977_v45 = vpop.f32.mrb[7].mxu1  ;;  %v772_v37 = vpop.f32.mrb[8].mxu0 }
 0x19a   :  { %1518 = vst [vmem:[%s3807_s2 + $0xc0] sm:$0xff] %v977_v45  ;;  %1522 = vst [vmem:[%s3807_s2 + $0xe0] sm:$0xff] %v772_v37  ;;  %v774_v36 = vpop.f32.mrb[9].mxu0 }
 0x19b   :  { %1523 = vst [vmem:[%s3807_s2 + $0xe8] sm:$0xff] %v774_v36 }
 0x19c   :  { %v981_v55 = vpop.f32.mrb[8].mxu1 }
 0x19d   :  { %1524 = vst [vmem:[%s3807_s2 + $0xf0] sm:$0xff] %v981_v55  ;;  %v983_v35 = vpop.f32.mrb[9].mxu1  ;;  %v778_v58 = vpop.f32.mrb[10].mxu0 }
 0x19e   :  { %1525 = vst [vmem:[%s3807_s2 + $0xf8] sm:$0xff] %v983_v35  ;;  %1529 = vst [vmem:[%s3807_s2 + $0x118] sm:$0xff] %v778_v58  ;;  %v780_v3 = vpop.f32.mrb[11].mxu0 }
 0x19f   :  { %1530 = vst [vmem:[%s3807_s2 + $0x120] sm:$0xff] %v780_v3 }
 0x1a0   :  { %v987_v44 = vpop.f32.mrb[10].mxu1 }
 0x1a1   :  { %1531 = vst [vmem:[%s3807_s2 + $0x128] sm:$0xff] %v987_v44  ;;  %v989_v0 = vpop.f32.mrb[11].mxu1  ;;  %v784_v1 = vpop.f32.mrb[12].mxu0 }
 0x1a2   :  { %1532 = vst [vmem:[%s3807_s2 + $0x130] sm:$0xff] %v989_v0  ;;  %1536 = vst [vmem:[%s3807_s2 + $0x150] sm:$0xff] %v784_v1  ;;  %v786_v48 = vpop.f32.mrb[13].mxu0 }
 0x1a3   :  { %1537 = vst [vmem:[%s3807_s2 + $0x158] sm:$0xff] %v786_v48 }
 0x1a4   :  { %v993_v31 = vpop.f32.mrb[12].mxu1 }
 0x1a5   :  { %1538 = vst [vmem:[%s3807_s2 + $0x160] sm:$0xff] %v993_v31  ;;  %v995_v40 = vpop.f32.mrb[13].mxu1  ;;  %v790_v33 = vpop.f32.mrb[14].mxu0 }
 0x1a6   :  { %1539 = vst [vmem:[%s3807_s2 + $0x168] sm:$0xff] %v995_v40  ;;  %1543 = vst [vmem:[%s3807_s2 + $0x188] sm:$0xff] %v790_v33  ;;  %v792_v5 = vpop.f32.mrb[15].mxu0 }
 0x1a7   :  { %1544 = vst [vmem:[%s3807_s2 + $0x190] sm:$0xff] %v792_v5 }
 0x1a8   :  { %v999_v6 = vpop.f32.mrb[14].mxu1 }
 0x1a9   :  { %1545 = vst [vmem:[%s3807_s2 + $0x198] sm:$0xff] %v999_v6  ;;  %v1001_v43 = vpop.f32.mrb[15].mxu1  ;;  %v796_v46 = vpop.f32.mrb[16].mxu0 }
 0x1aa   :  { %1546 = vst [vmem:[%s3807_s2 + $0x1a0] sm:$0xff] %v1001_v43  ;;  %1550 = vst [vmem:[%s3807_s2 + $0x1c0] sm:$0xff] %v796_v46  ;;  %v798_v24 = vpop.f32.mrb[17].mxu0 }
 0x1ab   :  { %1551 = vst [vmem:[%s3807_s2 + $0x1c8] sm:$0xff] %v798_v24 }
 0x1ac   :  { %v1005_v41 = vpop.f32.mrb[16].mxu1 }
 0x1ad   :  { %1552 = vst [vmem:[%s3807_s2 + $0x1d0] sm:$0xff] %v1005_v41  ;;  %v1007_v14 = vpop.f32.mrb[17].mxu1  ;;  %v802_v26 = vpop.f32.mrb[18].mxu0 }
 0x1ae   :  { %1553 = vst [vmem:[%s3807_s2 + $0x1d8] sm:$0xff] %v1007_v14  ;;  %1557 = vst [vmem:[%s3807_s2 + $0x1f8] sm:$0xff] %v802_v26  ;;  %v804_v27 = vpop.f32.mrb[19].mxu0 }
 0x1af   :  { %1558 = vst [vmem:[%s3807_s2 + $0x200] sm:$0xff] %v804_v27 }
 0x1b0   :  { %v1011_v20 = vpop.f32.mrb[18].mxu1 }
 0x1b1   :  { %1559 = vst [vmem:[%s3807_s2 + $0x208] sm:$0xff] %v1011_v20  ;;  %v1013_v47 = vpop.f32.mrb[19].mxu1  ;;  %v808_v23 = vpop.f32.mrb[20].mxu0 }
 0x1b2   :  { %1560 = vst [vmem:[%s3807_s2 + $0x210] sm:$0xff] %v1013_v47  ;;  %1564 = vst [vmem:[%s3807_s2 + $0x230] sm:$0xff] %v808_v23  ;;  %v810_v25 = vpop.f32.mrb[21].mxu0 }
 0x1b3   :  { %1565 = vst [vmem:[%s3807_s2 + $0x238] sm:$0xff] %v810_v25 }
 0x1b4   :  { %v1017_v10 = vpop.f32.mrb[20].mxu1 }
 0x1b5   :  { %1566 = vst [vmem:[%s3807_s2 + $0x240] sm:$0xff] %v1017_v10  ;;  %v1019_v18 = vpop.f32.mrb[21].mxu1  ;;  %v814_v15 = vpop.f32.mrb[22].mxu0 }
 0x1b6   :  { %1567 = vst [vmem:[%s3807_s2 + $0x248] sm:$0xff] %v1019_v18  ;;  %1571 = vst [vmem:[%s3807_s2 + $0x268] sm:$0xff] %v814_v15  ;;  %v816_v54 = vpop.f32.mrb[23].mxu0 }
 0x1b7   :  { %1572 = vst [vmem:[%s3807_s2 + $0x270] sm:$0xff] %v816_v54 }
 0x1b8   :  { %v1023_v8 = vpop.f32.mrb[22].mxu1 }
 0x1b9   :  { %1573 = vst [vmem:[%s3807_s2 + $0x278] sm:$0xff] %v1023_v8  ;;  %v1025_v11 = vpop.f32.mrb[23].mxu1  ;;  %v820_v13 = vpop.f32.mrb[24].mxu0 }
 0x1ba   :  { %1574 = vst [vmem:[%s3807_s2 + $0x280] sm:$0xff] %v1025_v11  ;;  %1578 = vst [vmem:[%s3807_s2 + $0x2a0] sm:$0xff] %v820_v13  ;;  %v822_v42 = vpop.f32.mrb[25].mxu0 }
 0x1bb   :  { %1579 = vst [vmem:[%s3807_s2 + $0x2a8] sm:$0xff] %v822_v42 }
 0x1bc   :  { %v1029_v19 = vpop.f32.mrb[24].mxu1 }
 0x1bd   :  { %1580 = vst [vmem:[%s3807_s2 + $0x2b0] sm:$0xff] %v1029_v19  ;;  %v1031_v32 = vpop.f32.mrb[25].mxu1  ;;  %v826_v51 = vpop.f32.mrb[26].mxu0 }
 0x1be   :  { %1581 = vst [vmem:[%s3807_s2 + $0x2b8] sm:$0xff] %v1031_v32  ;;  %1585 = vst [vmem:[%s3807_s2 + $0x2d8] sm:$0xff] %v826_v51  ;;  %v828_v59 = vpop.f32.mrb[27].mxu0 }
 0x1bf   :  { %1586 = vst [vmem:[%s3807_s2 + $0x2e0] sm:$0xff] %v828_v59 }
 0x1c0   :  { %v1035_v12 = vpop.f32.mrb[26].mxu1 }
 0x1c1   :  { %1587 = vst [vmem:[%s3807_s2 + $0x2e8] sm:$0xff] %v1035_v12  ;;  %v1037_v61 = vpop.f32.mrb[27].mxu1  ;;  %v832_v30 = vpop.f32.mrb[28].mxu0 }
 0x1c2   :  { %1588 = vst [vmem:[%s3807_s2 + $0x2f0] sm:$0xff] %v1037_v61  ;;  %1592 = vst [vmem:[%s3807_s2 + $0x310] sm:$0xff] %v832_v30  ;;  %v834_v56 = vpop.f32.mrb[29].mxu0 }
 0x1c3   :  { %1593 = vst [vmem:[%s3807_s2 + $0x318] sm:$0xff] %v834_v56 }
 0x1c4   :  { %v1041_v34 = vpop.f32.mrb[28].mxu1 }
 0x1c5   :  { %1594 = vst [vmem:[%s3807_s2 + $0x320] sm:$0xff] %v1041_v34  ;;  %v1043_v38 = vpop.f32.mrb[29].mxu1  ;;  %v838_v29 = vpop.f32.mrb[30].mxu0 }
 0x1c6   :  { %1595 = vst [vmem:[%s3807_s2 + $0x328] sm:$0xff] %v1043_v38  ;;  %1599 = vst [vmem:[%s3807_s2 + $0x348] sm:$0xff] %v838_v29  ;;  %v840_v17 = vpop.f32.mrb[31].mxu0 }
 0x1c7   :  { %1600 = vst [vmem:[%s3807_s2 + $0x350] sm:$0xff] %v840_v17 }
 0x1c8   :  { %v1047_v62 = vpop.f32.mrb[30].mxu1 }
 0x1c9   :  { %1601 = vst [vmem:[%s3807_s2 + $0x358] sm:$0xff] %v1047_v62  ;;  %v1049_v50 = vpop.f32.mrb[31].mxu1  ;;  %v844_v60 = vpop.f32.mrb[32].mxu0 }
 0x1ca   :  { %1602 = vst [vmem:[%s3807_s2 + $0x360] sm:$0xff] %v1049_v50  ;;  %1606 = vst [vmem:[%s3807_s2 + $0x380] sm:$0xff] %v844_v60  ;;  %v846_v49 = vpop.f32.mrb[33].mxu0 }
 0x1cb   :  { %1607 = vst [vmem:[%s3807_s2 + $0x388] sm:$0xff] %v846_v49 }
 0x1cc   :  { %v1053_v53 = vpop.f32.mrb[32].mxu1 }
 0x1cd   :  { %1608 = vst [vmem:[%s3807_s2 + $0x390] sm:$0xff] %v1053_v53  ;;  %v1055_v57 = vpop.f32.mrb[33].mxu1  ;;  %v850_v63 = vpop.f32.mrb[34].mxu0 }
 0x1ce   :  { %1609 = vst [vmem:[%s3807_s2 + $0x398] sm:$0xff] %v1055_v57  ;;  %1613 = vst [vmem:[%s3807_s2 + $0x3b8] sm:$0xff] %v850_v63  ;;  %v852_v22 = vpop.f32.mrb[35].mxu0 }
 0x1cf   :  { %1614 = vst [vmem:[%s3807_s2 + $0x3c0] sm:$0xff] %v852_v22 }
 0x1d0   :  { %v1059_v9 = vpop.f32.mrb[34].mxu1 }
 0x1d1   :  { %1615 = vst [vmem:[%s3807_s2 + $0x3c8] sm:$0xff] %v1059_v9  ;;  %v1061_v7 = vpop.f32.mrb[35].mxu1  ;;  %v856_v39 = vpop.f32.mrb[36].mxu0 }
 0x1d2   :  { %1616 = vst [vmem:[%s3807_s2 + $0x3d0] sm:$0xff] %v1061_v7  ;;  %1620 = vst [vmem:[%s3807_s2 + $0x3f0] sm:$0xff] %v856_v39  ;;  %v858_v16 = vpop.f32.mrb[37].mxu0 }
 0x1d3   :  { %1621 = vst [vmem:[%s3807_s2 + $0x3f8] sm:$0xff] %v858_v16 }
 0x1d4   :  { %v1065_v4 = vpop.f32.mrb[36].mxu1 }
 0x1d5   :  { %1622 = vst [vmem:[%s3807_s2 + $0x400] sm:$0xff] %v1065_v4  ;;  %v1067_v52 = vpop.f32.mrb[37].mxu1  ;;  %v862_v21 = vpop.f32.mrb[38].mxu0 }
 0x1d6   :  { %1623 = vst [vmem:[%s3807_s2 + $0x408] sm:$0xff] %v1067_v52  ;;  %1627 = vst [vmem:[%s3807_s2 + $0x428] sm:$0xff] %v862_v21  ;;  %v864_v28 = vpop.f32.mrb[39].mxu0 }
 0x1d7   :  { %1628 = vst [vmem:[%s3807_s2 + $0x430] sm:$0xff] %v864_v28 }
 0x1d8   :  { %v1071_v2 = vpop.f32.mrb[38].mxu1 }
 0x1d9   :  { %1629 = vst [vmem:[%s3807_s2 + $0x438] sm:$0xff] %v1071_v2  ;;  %v1073_v45 = vpop.f32.mrb[39].mxu1  ;;  %v868_v37 = vpop.f32.mrb[40].mxu0 }
 0x1da   :  { %1630 = vst [vmem:[%s3807_s2 + $0x440] sm:$0xff] %v1073_v45  ;;  %1634 = vst [vmem:[%s3807_s2 + $0x460] sm:$0xff] %v868_v37  ;;  %v870_v36 = vpop.f32.mrb[41].mxu0 }
 0x1db   :  { %1635 = vst [vmem:[%s3807_s2 + $0x468] sm:$0xff] %v870_v36 }
 0x1dc   :  { %v1077_v55 = vpop.f32.mrb[40].mxu1 }
 0x1dd   :  { %1636 = vst [vmem:[%s3807_s2 + $0x470] sm:$0xff] %v1077_v55  ;;  %v1079_v35 = vpop.f32.mrb[41].mxu1  ;;  %v874_v58 = vpop.f32.mrb[42].mxu0 }
 0x1de   :  { %1637 = vst [vmem:[%s3807_s2 + $0x478] sm:$0xff] %v1079_v35  ;;  %1641 = vst [vmem:[%s3807_s2 + $0x498] sm:$0xff] %v874_v58  ;;  %v876_v3 = vpop.f32.mrb[43].mxu0 }
 0x1df   :  { %1642 = vst [vmem:[%s3807_s2 + $0x4a0] sm:$0xff] %v876_v3 }
 0x1e0   :  { %v1083_v44 = vpop.f32.mrb[42].mxu1 }
 0x1e1   :  { %1643 = vst [vmem:[%s3807_s2 + $0x4a8] sm:$0xff] %v1083_v44  ;;  %v1085_v0 = vpop.f32.mrb[43].mxu1  ;;  %v880_v1 = vpop.f32.mrb[44].mxu0 }
 0x1e2   :  { %1644 = vst [vmem:[%s3807_s2 + $0x4b0] sm:$0xff] %v1085_v0  ;;  %1648 = vst [vmem:[%s3807_s2 + $0x4d0] sm:$0xff] %v880_v1  ;;  %v882_v48 = vpop.f32.mrb[45].mxu0 }
 0x1e3   :  { %1649 = vst [vmem:[%s3807_s2 + $0x4d8] sm:$0xff] %v882_v48 }
 0x1e4   :  { %v1089_v31 = vpop.f32.mrb[44].mxu1 }
 0x1e5   :  { %1650 = vst [vmem:[%s3807_s2 + $0x4e0] sm:$0xff] %v1089_v31  ;;  %v1091_v40 = vpop.f32.mrb[45].mxu1  ;;  %v886_v33 = vpop.f32.mrb[46].mxu0 }
 0x1e6   :  { %1651 = vst [vmem:[%s3807_s2 + $0x4e8] sm:$0xff] %v1091_v40  ;;  %1655 = vst [vmem:[%s3807_s2 + $0x508] sm:$0xff] %v886_v33  ;;  %v888_v5 = vpop.f32.mrb[47].mxu0 }
 0x1e7   :  { %1656 = vst [vmem:[%s3807_s2 + $0x510] sm:$0xff] %v888_v5 }
 0x1e8   :  { %v1095_v6 = vpop.f32.mrb[46].mxu1 }
 0x1e9   :  { %1657 = vst [vmem:[%s3807_s2 + $0x518] sm:$0xff] %v1095_v6  ;;  %v1097_v43 = vpop.f32.mrb[47].mxu1  ;;  %v1166_v46 = vpop.f32.mrb[48].mxu0 }
 0x1ea   :  { %1658 = vst [vmem:[%s3807_s2 + $0x520] sm:$0xff] %v1097_v43  ;;  %1498 = vst [vmem:[%s3807_s2 + $0x20] sm:$0xff] %v1166_v46  ;;  %v1168_v24 = vpop.f32.mrb[49].mxu0 }
 0x1eb   :  { %1499 = vst [vmem:[%s3807_s2 + $0x28] sm:$0xff] %v1168_v24 }
 0x1ec   :  { %v1375_v41 = vpop.f32.mrb[48].mxu1 }
 0x1ed   :  { %1500 = vst [vmem:[%s3807_s2 + $0x30] sm:$0xff] %v1375_v41  ;;  %v1377_v14 = vpop.f32.mrb[49].mxu1  ;;  %v1172_v26 = vpop.f32.mrb[50].mxu0 }
 0x1ee   :  { %1505 = vst [vmem:[%s3807_s2 + $0x58] sm:$0xff] %v1172_v26  ;;  %v1174_v27 = vpop.f32.mrb[51].mxu0 }
 0x1ef   :  { %1506 = vst [vmem:[%s3807_s2 + $0x60] sm:$0xff] %v1174_v27 }
 0x1f0   :  { %v1380_v20 = vpop.f32.mrb[50].mxu1 }
 0x1f1   :  { %1507 = vst [vmem:[%s3807_s2 + $0x68] sm:$0xff] %v1380_v20  ;;  %v1382_v47 = vpop.f32.mrb[51].mxu1  ;;  %v1178_v23 = vpop.f32.mrb[52].mxu0 }
 0x1f2   :  { %1512 = vst [vmem:[%s3807_s2 + $0x90] sm:$0xff] %v1178_v23  ;;  %v1180_v25 = vpop.f32.mrb[53].mxu0 }
 0x1f3   :  { %1513 = vst [vmem:[%s3807_s2 + $0x98] sm:$0xff] %v1180_v25 }
 0x1f4   :  { %v1385_v10 = vpop.f32.mrb[52].mxu1 }
 0x1f5   :  { %1514 = vst [vmem:[%s3807_s2 + $0xa0] sm:$0xff] %v1385_v10  ;;  %v1387_v18 = vpop.f32.mrb[53].mxu1  ;;  %v1184_v15 = vpop.f32.mrb[54].mxu0 }
 0x1f6   :  { %1519 = vst [vmem:[%s3807_s2 + $0xc8] sm:$0xff] %v1184_v15  ;;  %v1186_v54 = vpop.f32.mrb[55].mxu0 }
 0x1f7   :  { %1520 = vst [vmem:[%s3807_s2 + $0xd0] sm:$0xff] %v1186_v54 }
 0x1f8   :  { %v1390_v8 = vpop.f32.mrb[54].mxu1 }
 0x1f9   :  { %1521 = vst [vmem:[%s3807_s2 + $0xd8] sm:$0xff] %v1390_v8  ;;  %v1392_v11 = vpop.f32.mrb[55].mxu1  ;;  %v1190_v13 = vpop.f32.mrb[56].mxu0 }
 0x1fa   :  { %1526 = vst [vmem:[%s3807_s2 + $0x100] sm:$0xff] %v1190_v13  ;;  %v1192_v42 = vpop.f32.mrb[57].mxu0 }
 0x1fb   :  { %1527 = vst [vmem:[%s3807_s2 + $0x108] sm:$0xff] %v1192_v42 }
 0x1fc   :  { %v1395_v19 = vpop.f32.mrb[56].mxu1 }
 0x1fd   :  { %1528 = vst [vmem:[%s3807_s2 + $0x110] sm:$0xff] %v1395_v19  ;;  %v1397_v32 = vpop.f32.mrb[57].mxu1  ;;  %v1196_v51 = vpop.f32.mrb[58].mxu0 }
 0x1fe   :  { %1533 = vst [vmem:[%s3807_s2 + $0x138] sm:$0xff] %v1196_v51  ;;  %v1198_v59 = vpop.f32.mrb[59].mxu0 }
 0x1ff   :  { %1534 = vst [vmem:[%s3807_s2 + $0x140] sm:$0xff] %v1198_v59 }
 0x200   :  { %v1400_v12 = vpop.f32.mrb[58].mxu1 }
 0x201   :  { %1535 = vst [vmem:[%s3807_s2 + $0x148] sm:$0xff] %v1400_v12  ;;  %v1402_v61 = vpop.f32.mrb[59].mxu1  ;;  %v1202_v30 = vpop.f32.mrb[60].mxu0 }
 0x202   :  { %1540 = vst [vmem:[%s3807_s2 + $0x170] sm:$0xff] %v1202_v30  ;;  %v1204_v56 = vpop.f32.mrb[61].mxu0 }
 0x203   :  { %1541 = vst [vmem:[%s3807_s2 + $0x178] sm:$0xff] %v1204_v56 }
 0x204   :  { %v1405_v34 = vpop.f32.mrb[60].mxu1 }
 0x205   :  { %1542 = vst [vmem:[%s3807_s2 + $0x180] sm:$0xff] %v1405_v34  ;;  %v1407_v38 = vpop.f32.mrb[61].mxu1  ;;  %v1208_v29 = vpop.f32.mrb[62].mxu0 }
 0x206   :  { %1547 = vst [vmem:[%s3807_s2 + $0x1a8] sm:$0xff] %v1208_v29  ;;  %v1210_v17 = vpop.f32.mrb[63].mxu0 }
 0x207   :  { %1548 = vst [vmem:[%s3807_s2 + $0x1b0] sm:$0xff] %v1210_v17 }
 0x208   :  { %v1410_v62 = vpop.f32.mrb[62].mxu1 }
 0x209   :  { %1549 = vst [vmem:[%s3807_s2 + $0x1b8] sm:$0xff] %v1410_v62  ;;  %v1412_v50 = vpop.f32.mrb[63].mxu1  ;;  %v1214_v60 = vpop.f32.mrb[64].mxu0 }
 0x20a   :  { %1554 = vst [vmem:[%s3807_s2 + $0x1e0] sm:$0xff] %v1214_v60  ;;  %v1216_v49 = vpop.f32.mrb[65].mxu0 }
 0x20b   :  { %1555 = vst [vmem:[%s3807_s2 + $0x1e8] sm:$0xff] %v1216_v49 }
 0x20c   :  { %v1415_v53 = vpop.f32.mrb[64].mxu1 }
 0x20d   :  { %1556 = vst [vmem:[%s3807_s2 + $0x1f0] sm:$0xff] %v1415_v53  ;;  %v1417_v57 = vpop.f32.mrb[65].mxu1  ;;  %v1220_v63 = vpop.f32.mrb[66].mxu0 }
 0x20e   :  { %1561 = vst [vmem:[%s3807_s2 + $0x218] sm:$0xff] %v1220_v63  ;;  %v1222_v22 = vpop.f32.mrb[67].mxu0 }
 0x20f   :  { %1562 = vst [vmem:[%s3807_s2 + $0x220] sm:$0xff] %v1222_v22 }
 0x210   :  { %v1420_v9 = vpop.f32.mrb[66].mxu1 }
 0x211   :  { %1563 = vst [vmem:[%s3807_s2 + $0x228] sm:$0xff] %v1420_v9  ;;  %v1422_v7 = vpop.f32.mrb[67].mxu1  ;;  %v1226_v39 = vpop.f32.mrb[68].mxu0 }
 0x212   :  { %1568 = vst [vmem:[%s3807_s2 + $0x250] sm:$0xff] %v1226_v39  ;;  %v1228_v16 = vpop.f32.mrb[69].mxu0 }
 0x213   :  { %1569 = vst [vmem:[%s3807_s2 + $0x258] sm:$0xff] %v1228_v16 }
 0x214   :  { %v1425_v4 = vpop.f32.mrb[68].mxu1 }
 0x215   :  { %1570 = vst [vmem:[%s3807_s2 + $0x260] sm:$0xff] %v1425_v4  ;;  %v1427_v52 = vpop.f32.mrb[69].mxu1  ;;  %v1232_v21 = vpop.f32.mrb[70].mxu0 }
 0x216   :  { %1575 = vst [vmem:[%s3807_s2 + $0x288] sm:$0xff] %v1232_v21  ;;  %v1234_v28 = vpop.f32.mrb[71].mxu0 }
 0x217   :  { %1576 = vst [vmem:[%s3807_s2 + $0x290] sm:$0xff] %v1234_v28 }
 0x218   :  { %v1430_v2 = vpop.f32.mrb[70].mxu1 }
 0x219   :  { %1577 = vst [vmem:[%s3807_s2 + $0x298] sm:$0xff] %v1430_v2  ;;  %v1432_v45 = vpop.f32.mrb[71].mxu1  ;;  %v1238_v37 = vpop.f32.mrb[72].mxu0 }
 0x21a   :  { %1582 = vst [vmem:[%s3807_s2 + $0x2c0] sm:$0xff] %v1238_v37  ;;  %v1240_v36 = vpop.f32.mrb[73].mxu0 }
 0x21b   :  { %1583 = vst [vmem:[%s3807_s2 + $0x2c8] sm:$0xff] %v1240_v36 }
 0x21c   :  { %v1435_v55 = vpop.f32.mrb[72].mxu1 }
 0x21d   :  { %1584 = vst [vmem:[%s3807_s2 + $0x2d0] sm:$0xff] %v1435_v55  ;;  %v1437_v35 = vpop.f32.mrb[73].mxu1  ;;  %v1244_v58 = vpop.f32.mrb[74].mxu0 }
 0x21e   :  { %1589 = vst [vmem:[%s3807_s2 + $0x2f8] sm:$0xff] %v1244_v58  ;;  %v1246_v3 = vpop.f32.mrb[75].mxu0 }
 0x21f   :  { %1590 = vst [vmem:[%s3807_s2 + $0x300] sm:$0xff] %v1246_v3 }
 0x220   :  { %v1440_v44 = vpop.f32.mrb[74].mxu1 }
 0x221   :  { %1591 = vst [vmem:[%s3807_s2 + $0x308] sm:$0xff] %v1440_v44  ;;  %v1442_v0 = vpop.f32.mrb[75].mxu1  ;;  %v1250_v1 = vpop.f32.mrb[76].mxu0 }
 0x222   :  { %1596 = vst [vmem:[%s3807_s2 + $0x330] sm:$0xff] %v1250_v1  ;;  %v1252_v48 = vpop.f32.mrb[77].mxu0 }
 0x223   :  { %1597 = vst [vmem:[%s3807_s2 + $0x338] sm:$0xff] %v1252_v48 }
 0x224   :  { %v1445_v31 = vpop.f32.mrb[76].mxu1 }
 0x225   :  { %1598 = vst [vmem:[%s3807_s2 + $0x340] sm:$0xff] %v1445_v31  ;;  %v1447_v40 = vpop.f32.mrb[77].mxu1  ;;  %v1256_v33 = vpop.f32.mrb[78].mxu0 }
 0x226   :  { %1603 = vst [vmem:[%s3807_s2 + $0x368] sm:$0xff] %v1256_v33  ;;  %v1258_v5 = vpop.f32.mrb[79].mxu0 }
 0x227   :  { %1604 = vst [vmem:[%s3807_s2 + $0x370] sm:$0xff] %v1258_v5 }
 0x228   :  { %v1450_v6 = vpop.f32.mrb[78].mxu1 }
 0x229   :  { %1605 = vst [vmem:[%s3807_s2 + $0x378] sm:$0xff] %v1450_v6  ;;  %v1452_v43 = vpop.f32.mrb[79].mxu1  ;;  %v1262_v46 = vpop.f32.mrb[80].mxu0 }
 0x22a   :  { %1610 = vst [vmem:[%s3807_s2 + $0x3a0] sm:$0xff] %v1262_v46  ;;  %v1264_v24 = vpop.f32.mrb[81].mxu0 }
 0x22b   :  { %1611 = vst [vmem:[%s3807_s2 + $0x3a8] sm:$0xff] %v1264_v24 }
 0x22c   :  { %v1455_v41 = vpop.f32.mrb[80].mxu1 }
 0x22d   :  { %1612 = vst [vmem:[%s3807_s2 + $0x3b0] sm:$0xff] %v1455_v41  ;;  %v1457_v14 = vpop.f32.mrb[81].mxu1  ;;  %v1268_v26 = vpop.f32.mrb[82].mxu0 }
 0x22e   :  { %1617 = vst [vmem:[%s3807_s2 + $0x3d8] sm:$0xff] %v1268_v26  ;;  %v1270_v27 = vpop.f32.mrb[83].mxu0 }
 0x22f   :  { %1618 = vst [vmem:[%s3807_s2 + $0x3e0] sm:$0xff] %v1270_v27 }
 0x230   :  { %v1460_v20 = vpop.f32.mrb[82].mxu1 }
 0x231   :  { %1619 = vst [vmem:[%s3807_s2 + $0x3e8] sm:$0xff] %v1460_v20  ;;  %v1462_v47 = vpop.f32.mrb[83].mxu1  ;;  %v1274_v23 = vpop.f32.mrb[84].mxu0 }
 0x232   :  { %1624 = vst [vmem:[%s3807_s2 + $0x410] sm:$0xff] %v1274_v23  ;;  %v1276_v25 = vpop.f32.mrb[85].mxu0 }
 0x233   :  { %1625 = vst [vmem:[%s3807_s2 + $0x418] sm:$0xff] %v1276_v25 }
 0x234   :  { %v1465_v10 = vpop.f32.mrb[84].mxu1 }
 0x235   :  { %1626 = vst [vmem:[%s3807_s2 + $0x420] sm:$0xff] %v1465_v10  ;;  %v1467_v18 = vpop.f32.mrb[85].mxu1  ;;  %v1280_v15 = vpop.f32.mrb[86].mxu0 }
 0x236   :  { %1631 = vst [vmem:[%s3807_s2 + $0x448] sm:$0xff] %v1280_v15  ;;  %v1282_v54 = vpop.f32.mrb[87].mxu0 }
 0x237   :  { %1632 = vst [vmem:[%s3807_s2 + $0x450] sm:$0xff] %v1282_v54 }
 0x238   :  { %v1470_v8 = vpop.f32.mrb[86].mxu1 }
 0x239   :  { %1633 = vst [vmem:[%s3807_s2 + $0x458] sm:$0xff] %v1470_v8  ;;  %v1472_v11 = vpop.f32.mrb[87].mxu1  ;;  %v1286_v13 = vpop.f32.mrb[88].mxu0 }
 0x23a   :  { %1638 = vst [vmem:[%s3807_s2 + $0x480] sm:$0xff] %v1286_v13  ;;  %v1288_v42 = vpop.f32.mrb[89].mxu0 }
 0x23b   :  { %1639 = vst [vmem:[%s3807_s2 + $0x488] sm:$0xff] %v1288_v42 }
 0x23c   :  { %v1475_v19 = vpop.f32.mrb[88].mxu1 }
 0x23d   :  { %1640 = vst [vmem:[%s3807_s2 + $0x490] sm:$0xff] %v1475_v19  ;;  %v1477_v32 = vpop.f32.mrb[89].mxu1  ;;  %v1292_v51 = vpop.f32.mrb[90].mxu0 }
 0x23e   :  { %1645 = vst [vmem:[%s3807_s2 + $0x4b8] sm:$0xff] %v1292_v51  ;;  %v1294_v59 = vpop.f32.mrb[91].mxu0 }
 0x23f   :  { %1646 = vst [vmem:[%s3807_s2 + $0x4c0] sm:$0xff] %v1294_v59 }
 0x240   :  { %v1480_v12 = vpop.f32.mrb[90].mxu1 }
 0x241   :  { %1647 = vst [vmem:[%s3807_s2 + $0x4c8] sm:$0xff] %v1480_v12  ;;  %v1482_v61 = vpop.f32.mrb[91].mxu1  ;;  %v1298_v30 = vpop.f32.mrb[92].mxu0 }
 0x242   :  { %1652 = vst [vmem:[%s3807_s2 + $0x4f0] sm:$0xff] %v1298_v30  ;;  %v1300_v56 = vpop.f32.mrb[93].mxu0 }
 0x243   :  { %1653 = vst [vmem:[%s3807_s2 + $0x4f8] sm:$0xff] %v1300_v56 }
 0x244   :  { %v1485_v34 = vpop.f32.mrb[92].mxu1 }
 0x245   :  { %1654 = vst [vmem:[%s3807_s2 + $0x500] sm:$0xff] %v1485_v34  ;;  %v1487_v38 = vpop.f32.mrb[93].mxu1  ;;  %v1304_v29 = vpop.f32.mrb[94].mxu0 }
 0x246   :  { %1659 = vst [vmem:[%s3807_s2 + $0x528] sm:$0xff] %v1304_v29  ;;  %v1306_v17 = vpop.f32.mrb[95].mxu0 }
 0x247   :  { %1660 = vst [vmem:[%s3807_s2 + $0x530] sm:$0xff] %v1306_v17 }
 0x248   :  { %v1490_v62 = vpop.f32.mrb[94].mxu1 }
 0x249   :  { %1661 = vst [vmem:[%s3807_s2 + $0x538] sm:$0xff] %v1490_v62  ;;  %v1492_v50 = vpop.f32.mrb[95].mxu1 }

</bundles_post_ra>
